<compile_context>
chip_gen: v5e
topology: v5e:2x2
jax: 0.10.0
libtpu: 0.0.40
codegen_flags: <defaults>
</compile_context>

<pallas_src>
import math
from functools import partial

import jax
import jax.numpy as jnp
from jax.experimental import pallas as pl
from jax.experimental.pallas import tpu as pltpu


def _fused_mha_kernel(q_ref, k_ref, v_ref, wqt_ref, wkt_ref, wvt_ref,
                      gamma_ref, beta_ref, out_ref, *rest,
                      n_heads, d_key, d_value, eps, emit_attention):
    """Grid point = (batch b, q tile qi, kv tile ki)."""
    if emit_attention:
        attn_ref, qp_ref, m_ref, l_ref, acc_ref = rest
    else:
        attn_ref = None
        qp_ref, m_ref, l_ref, acc_ref = rest

    ki = pl.program_id(2)
    n_kv = pl.num_programs(2)

    q_in = q_ref[0]                       # (tq, D), input/compute dtype
    cdt = q_in.dtype

    # ---- per-q-tile init (kv step 0): project Q once, reset softmax state.
    @pl.when(ki == 0)
    def _init():
        qp_ref[...] = jnp.dot(q_in, wqt_ref[...],
                              preferred_element_type=jnp.float32).astype(cdt)
        m_ref[...] = jnp.full_like(m_ref, -jnp.inf)
        l_ref[...] = jnp.zeros_like(l_ref)
        acc_ref[...] = jnp.zeros_like(acc_ref)

    # ---- per-kv-step: full-width K/V projections (fills MXU columns),
    # narrowed to the compute dtype before the score / PV matmuls.
    kp = jnp.dot(k_ref[0], wkt_ref[...],
                 preferred_element_type=jnp.float32).astype(cdt)   # (tk, H*dk)
    vp = jnp.dot(v_ref[0], wvt_ref[...],
                 preferred_element_type=jnp.float32).astype(cdt)   # (tk, H*dv)

    # Per-head online softmax; each head writes directly into the f32
    # accumulator slab (no Python list, no concatenate).
    for h in range(n_heads):
        qh = qp_ref[:, h * d_key:(h + 1) * d_key]                  # (tq, dk)
        kh = kp[:, h * d_key:(h + 1) * d_key]                      # (tk, dk)
        vh = vp[:, h * d_value:(h + 1) * d_value]                  # (tk, dv)

        # NT contraction (contract last axes): no in-kernel transpose of K.
        s = jax.lax.dot_general(qh, kh, (((1,), (1,)), ((), ())),
                                preferred_element_type=jnp.float32)  # (tq, tk)

        m_prev = m_ref[h]                                          # (tq, 1)
        m_new = jnp.maximum(m_prev, jnp.max(s, axis=-1, keepdims=True))
        alpha = jnp.exp(m_prev - m_new)
        p = jnp.exp(s - m_new)                                     # (tq, tk)
        l_new = alpha * l_ref[h] + jnp.sum(p, axis=-1, keepdims=True)

        sl = slice(h * d_value, (h + 1) * d_value)
        acc_ref[:, sl] = alpha * acc_ref[:, sl] + jnp.dot(
            p.astype(cdt), vh, preferred_element_type=jnp.float32)

        m_ref[h] = m_new
        l_ref[h] = l_new

        if emit_attention:
            # Only valid when the kv axis is untiled (wrapper enforces
            # tk == S_k): p is then the exact shifted-exp scores and l_new
            # the exact row sum.  Exact divide so returned probabilities
            # sum to 1; the fused output path keeps the approx reciprocal.
            attn_ref[0, h] = (p / l_new).astype(attn_ref.dtype)

    # ---- per-q-tile finalize: normalize, residual add, fused LayerNorm.
    @pl.when(ki == n_kv - 1)
    def _finalize():
        for h in range(n_heads):
            sl = slice(h * d_value, (h + 1) * d_value)
            acc_ref[:, sl] = acc_ref[:, sl] * pl.reciprocal(l_ref[h],
                                                            approx=True)
        x = acc_ref[...] + q_in.astype(jnp.float32)        # residual (res = q)
        inv_d = 1.0 / x.shape[-1]
        mu = jnp.sum(x, axis=-1, keepdims=True) * inv_d
        ex2 = jnp.sum(x * x, axis=-1, keepdims=True) * inv_d
        var = jnp.maximum(ex2 - mu * mu, 0.0)              # one-pass LN stats
        y = (x - mu) * jax.lax.rsqrt(var + eps)
        y = (y * gamma_ref[...].astype(jnp.float32)
             + beta_ref[...].astype(jnp.float32))
        out_ref[0] = y.astype(out_ref.dtype)


def _vmem_limit_bytes(*, tq, tk, sk, d_model, hdk, hdv, n_heads, itemsize,
                      emit_attention):
    """Rough resident-working-set estimate for an explicit VMEM budget."""
    dbl = 2                                              # pipeline buffers
    est = dbl * tq * d_model * itemsize                  # q block
    est += 2 * dbl * tk * d_model * itemsize             # k, v blocks
    est += dbl * d_model * (2 * hdk + hdv) * itemsize    # weights (const idx)
    est += 2 * dbl * d_model * itemsize                  # gamma, beta
    est += dbl * tq * d_model * itemsize                 # out block
    if emit_attention:
        est += dbl * n_heads * tq * sk * itemsize        # attn block
    # scratch: qp + m/l (lane-padded) + acc slab + (tq, tk) f32 temporaries
    est += tq * hdk * itemsize
    est += 2 * n_heads * tq * 128 * 4
    est += tq * hdv * 4
    est += 4 * tq * max(tk, 128) * 4
    # 2x headroom for compiler temporaries; stay under v7x's 64 MiB / TC.
    return int(min(max(2 * est, 32 * 2**20), 64 * 2**20))


def multi_head_attention(q, k, v, wq, wk, wv, gamma, beta, *,
                         n_heads, d_key, d_value, eps=1e-5,
                         return_attention=True, block_q=128, block_kv=128,
                         compute_dtype=None):
    B, Sq, D = q.shape
    Bk, Sk, Dk = k.shape
    Bv, Sv, Dv = v.shape
    assert B == Bk == Bv and D == Dk == Dv and Sk == Sv
    assert D == n_heads * d_key
    assert D == n_heads * d_value  # residual add needs concat width == dim_model

    # Optional narrow compute dtype (e.g. jnp.bfloat16 on v6e/v7x); MXU still
    # accumulates in f32 via preferred_element_type.
    if compute_dtype is not None:
        q, k, v = (a.astype(compute_dtype) for a in (q, k, v))
    cdt = q.dtype

    # One-time weight prep: PyTorch Linear stores (out, in); transpose to
    # (in, out) and fold the 1/sqrt(d_key) attention scale into w_q.
    wq_t = (wq.T / math.sqrt(d_key)).astype(cdt)
    wk_t = wk.T.astype(cdt)
    wv_t = wv.T.astype(cdt)
    # TODO(synk): for self-attention (q is k is v) concatenate the three
    # pre-transposed weights into (D, 3D) and do one projection matmul.

    def pick_tile(s, blk):
        t = min(blk, s)
        if s % t != 0 or (t % 8 != 0 and t != s):
            t = s
        return t

    tq = pick_tile(Sq, block_q)
    # Exact attention probabilities need the whole kv row per q tile.
    tk = Sk if return_attention else pick_tile(Sk, block_kv)
    n_q, n_kv = Sq // tq, Sk // tk
    grid = (B, n_q, n_kv)

    hdk, hdv = n_heads * d_key, n_heads * d_value

    in_specs = [
        pl.BlockSpec((1, tq, D), lambda b, qi, ki: (b, qi, 0)),   # q
        pl.BlockSpec((1, tk, D), lambda b, qi, ki: (b, ki, 0)),   # k
        pl.BlockSpec((1, tk, D), lambda b, qi, ki: (b, ki, 0)),   # v
        pl.BlockSpec((D, hdk), lambda b, qi, ki: (0, 0)),         # wq^T (scaled)
        pl.BlockSpec((D, hdk), lambda b, qi, ki: (0, 0)),         # wk^T
        pl.BlockSpec((D, hdv), lambda b, qi, ki: (0, 0)),         # wv^T
        pl.BlockSpec((1, D), lambda b, qi, ki: (0, 0)),           # gamma
        pl.BlockSpec((1, D), lambda b, qi, ki: (0, 0)),           # beta
    ]
    scratch_shapes = [
        pltpu.VMEM((tq, hdk), cdt),                      # qp (per q tile)
        pltpu.VMEM((n_heads, tq, 1), jnp.float32),       # m (running max)
        pltpu.VMEM((n_heads, tq, 1), jnp.float32),       # l (running denom)
        pltpu.VMEM((tq, hdv), jnp.float32),              # accumulator slab
    ]

    if return_attention:
        out_shape = (jax.ShapeDtypeStruct((B, Sq, D), cdt),
                     jax.ShapeDtypeStruct((B, n_heads, Sq, Sk), cdt))
        out_specs = (
            pl.BlockSpec((1, tq, D), lambda b, qi, ki: (b, qi, 0)),
            pl.BlockSpec((1, n_heads, tq, Sk), lambda b, qi, ki: (b, 0, qi, 0)),
        )
    else:
        out_shape = jax.ShapeDtypeStruct((B, Sq, D), cdt)
        out_specs = pl.BlockSpec((1, tq, D), lambda b, qi, ki: (b, qi, 0))

    vmem_limit = _vmem_limit_bytes(
        tq=tq, tk=tk, sk=Sk, d_model=D, hdk=hdk, hdv=hdv, n_heads=n_heads,
        itemsize=jnp.dtype(cdt).itemsize, emit_attention=return_attention)

    kernel = partial(_fused_mha_kernel, n_heads=n_heads, d_key=d_key,
                     d_value=d_value, eps=eps,
                     emit_attention=return_attention)

    result = pl.pallas_call(
        kernel,
        out_shape=out_shape,
        grid=grid,
        in_specs=in_specs,
        out_specs=out_specs,
        scratch_shapes=scratch_shapes,
        compiler_params=pltpu.CompilerParams(
            # batch + q-tile axes shard across TensorCores (v7x megacore);
            # kv axis is the (sequential) online-softmax reduction.
            dimension_semantics=("parallel", "parallel", "arbitrary"),
            vmem_limit_bytes=vmem_limit),
    )(q, k, v, wq_t, wk_t, wv_t, gamma.reshape(1, D), beta.reshape(1, D))

    if return_attention:
        out, attn = result
        return out, attn
    return result, None


def _reference(q, k, v, wq, wk, wv, gamma, beta, *, n_heads, d_key, d_value,
               eps=1e-5):
    """Pure-JAX reference mirroring the PyTorch forward (eval mode)."""
    B, S, D = q.shape
    Sk = k.shape[1]
    Q = (q @ wq.T).reshape(B, S, n_heads, d_key).transpose(0, 2, 1, 3)
    K = (k @ wk.T).reshape(B, Sk, n_heads, d_key).transpose(0, 2, 1, 3)
    V = (v @ wv.T).reshape(B, Sk, n_heads, d_value).transpose(0, 2, 1, 3)
    scores = (Q / math.sqrt(d_key)) @ jnp.swapaxes(K, 2, 3)
    attn = jax.nn.softmax(scores, axis=-1)
    o = attn @ V
    o = jnp.swapaxes(o, 1, 2).reshape(B, S, n_heads * d_value)
    x = o + q
    mu = x.mean(-1, keepdims=True)
    var = ((x - mu) ** 2).mean(-1, keepdims=True)
    out = (x - mu) / jnp.sqrt(var + eps) * gamma + beta
    return out, attn


if __name__ == "__main__":
    B, S = 2, 16
    N_HEADS, D_KEY, D_VALUE = 4, 8, 8
    DIM_MODEL = N_HEADS * D_KEY  # 32

    key = jax.random.PRNGKey(0)
    kq, kk, kv_, kwq, kwk, kwv = jax.random.split(key, 6)

    q = jax.random.normal(kq, (B, S, DIM_MODEL), jnp.float32)
    k = jax.random.normal(kk, (B, S, DIM_MODEL), jnp.float32)
    v = jax.random.normal(kv_, (B, S, DIM_MODEL), jnp.float32)

    # Linear weights, PyTorch convention (out_features, in_features), bias=False.
    wq = 0.1 * jax.random.normal(kwq, (N_HEADS * D_KEY, DIM_MODEL), jnp.float32)
    wk = 0.1 * jax.random.normal(kwk, (N_HEADS * D_KEY, DIM_MODEL), jnp.float32)
    wv = 0.1 * jax.random.normal(kwv, (N_HEADS * D_VALUE, DIM_MODEL), jnp.float32)

    # LayerNorm params (PyTorch default init: weight=1, bias=0).
    gamma = jnp.ones((DIM_MODEL,), jnp.float32)
    beta = jnp.zeros((DIM_MODEL,), jnp.float32)

    # Path 1: attention probabilities requested -> kv axis untiled, attn is
    # written per q tile as (1, H, tq, S_k) blocks (never whole (1,H,S,S)).
    out, attn = multi_head_attention(
        q, k, v, wq, wk, wv, gamma, beta,
        n_heads=N_HEADS, d_key=D_KEY, d_value=D_VALUE,
        return_attention=True, block_q=8, block_kv=8)
    out = jax.block_until_ready(out)
    attn = jax.block_until_ready(attn)

    # Path 2: perf path -> flash-style kv tiling with online softmax
    # (2 q tiles x 2 kv tiles at this test size), no attention writeback.
    out_only, _ = multi_head_attention(
        q, k, v, wq, wk, wv, gamma, beta,
        n_heads=N_HEADS, d_key=D_KEY, d_value=D_VALUE,
        return_attention=False, block_q=8, block_kv=8)
    out_only = jax.block_until_ready(out_only)

    ref_out, ref_attn = _reference(
        q, k, v, wq, wk, wv, gamma, beta,
        n_heads=N_HEADS, d_key=D_KEY, d_value=D_VALUE)

    assert out.shape == (B, S, DIM_MODEL)
    assert attn.shape == (B, N_HEADS, S, S)
    # Tolerances account for the approximate (EUP) softmax reciprocal.
    assert jnp.allclose(out, ref_out, atol=2e-3, rtol=2e-3)
    assert jnp.allclose(attn, ref_attn, atol=2e-3, rtol=2e-3)
    assert jnp.allclose(out_only, ref_out, atol=2e-3, rtol=2e-3)
    assert jnp.allclose(out_only, out, atol=2e-3, rtol=2e-3)

    print("KERNEL_OK")
</pallas_src>

<mosaic_0001>
module attributes {stable_mosaic.version = 11 : i64} {
  func.func @_fused_mha_kernel(%arg0: i32, %arg1: i32, %arg2: i32, %arg3: memref<1x8x32xf32, #tpu.memory_space<vmem>>, %arg4: memref<1x16x32xf32, #tpu.memory_space<vmem>>, %arg5: memref<1x16x32xf32, #tpu.memory_space<vmem>>, %arg6: memref<32x32xf32, #tpu.memory_space<vmem>>, %arg7: memref<32x32xf32, #tpu.memory_space<vmem>>, %arg8: memref<32x32xf32, #tpu.memory_space<vmem>>, %arg9: memref<1x32xf32, #tpu.memory_space<vmem>>, %arg10: memref<1x32xf32, #tpu.memory_space<vmem>>, %arg11: memref<1x8x32xf32, #tpu.memory_space<vmem>>, %arg12: memref<1x4x8x16xf32, #tpu.memory_space<vmem>>, %arg13: memref<8x32xf32, #tpu.memory_space<vmem>>, %arg14: memref<4x8x1xf32, #tpu.memory_space<vmem>>, %arg15: memref<4x8x1xf32, #tpu.memory_space<vmem>>, %arg16: memref<8x32xf32, #tpu.memory_space<vmem>>) attributes {dimension_semantics = [#tpu.dimension_semantics<parallel>, #tpu.dimension_semantics<parallel>, #tpu.dimension_semantics<arbitrary>], iteration_bounds = array<i64: 2, 2, 1>, scalar_prefetch = 0 : i64, scratch_operands = 4 : i64, tpu.core_type = #tpu.core_type<tc>, window_params = [{transform_indices = @transform_0, window_bounds = array<i64: 1, 8, 32>}, {transform_indices = @transform_1, window_bounds = array<i64: 1, 16, 32>}, {transform_indices = @transform_2, window_bounds = array<i64: 1, 16, 32>}, {pipeline_mode = #tpu.pipeline_mode<synchronous>, transform_indices = @transform_3, window_bounds = array<i64: 32, 32>}, {pipeline_mode = #tpu.pipeline_mode<synchronous>, transform_indices = @transform_4, window_bounds = array<i64: 32, 32>}, {pipeline_mode = #tpu.pipeline_mode<synchronous>, transform_indices = @transform_5, window_bounds = array<i64: 32, 32>}, {pipeline_mode = #tpu.pipeline_mode<synchronous>, transform_indices = @transform_6, window_bounds = array<i64: 1, 32>}, {pipeline_mode = #tpu.pipeline_mode<synchronous>, transform_indices = @transform_7, window_bounds = array<i64: 1, 32>}, {transform_indices = @transform_8, window_bounds = array<i64: 1, 8, 32>}, {transform_indices = @transform_9, window_bounds = array<i64: 1, 4, 8, 16>}]} {
    %c0 = arith.constant 0 : index
    %c0_0 = arith.constant 0 : index
    %c0_1 = arith.constant 0 : index
    %0 = vector.load %arg3[%c0, %c0_0, %c0_1] : memref<1x8x32xf32, #tpu.memory_space<vmem>>, vector<1x8x32xf32>
    %1 = vector.shape_cast %0 : vector<1x8x32xf32> to vector<8x32xf32>
    %c0_i32 = arith.constant 0 : i32
    %2 = arith.cmpi eq, %arg2, %c0_i32 : i32
    %3 = arith.extui %2 : i1 to i32
    %c0_i32_2 = arith.constant 0 : i32
    %4 = arith.cmpi ne, %3, %c0_i32_2 : i32
    scf.if %4 {
      %c0_114 = arith.constant 0 : index
      %c0_115 = arith.constant 0 : index
      %164 = vector.load %arg6[%c0_114, %c0_115] : memref<32x32xf32, #tpu.memory_space<vmem>>, vector<32x32xf32>
      %cst_116 = arith.constant dense<0.000000e+00> : vector<8x32xf32>
      %165 = tpu.matmul %1, %164, %cst_116 {dimension_numbers = #tpu.dot_dimension_numbers<[1], [0], [0], [1], [0, 0, 1, 1], [], []>} : vector<8x32xf32>, vector<32x32xf32>, vector<8x32xf32> -> vector<8x32xf32>
      %c0_117 = arith.constant 0 : index
      %c0_118 = arith.constant 0 : index
      %166 = vector.load %arg13[%c0_117, %c0_118] : memref<8x32xf32, #tpu.memory_space<vmem>>, vector<8x32xf32>
      tpu.vector_store %arg13[%c0_117, %c0_118], %165 {strides = array<i32>} : memref<8x32xf32, #tpu.memory_space<vmem>>, vector<8x32xf32>,
      %cst_119 = arith.constant 0xFF800000 : f32
      %167 = vector.broadcast %cst_119 : f32 to vector<4x8x1xf32>
      %c0_120 = arith.constant 0 : index
      %c0_121 = arith.constant 0 : index
      %c0_122 = arith.constant 0 : index
      %168 = vector.load %arg14[%c0_120, %c0_121, %c0_122] : memref<4x8x1xf32, #tpu.memory_space<vmem>>, vector<4x8x1xf32>
      tpu.vector_store %arg14[%c0_120, %c0_121, %c0_122], %167 {strides = array<i32>} : memref<4x8x1xf32, #tpu.memory_space<vmem>>, vector<4x8x1xf32>,
      %cst_123 = arith.constant 0.000000e+00 : f32
      %169 = vector.broadcast %cst_123 : f32 to vector<4x8x1xf32>
      %c0_124 = arith.constant 0 : index
      %c0_125 = arith.constant 0 : index
      %c0_126 = arith.constant 0 : index
      %170 = vector.load %arg15[%c0_124, %c0_125, %c0_126] : memref<4x8x1xf32, #tpu.memory_space<vmem>>, vector<4x8x1xf32>
      tpu.vector_store %arg15[%c0_124, %c0_125, %c0_126], %169 {strides = array<i32>} : memref<4x8x1xf32, #tpu.memory_space<vmem>>, vector<4x8x1xf32>,
      %cst_127 = arith.constant 0.000000e+00 : f32
      %171 = vector.broadcast %cst_127 : f32 to vector<8x32xf32>
      %c0_128 = arith.constant 0 : index
      %c0_129 = arith.constant 0 : index
      %172 = vector.load %arg16[%c0_128, %c0_129] : memref<8x32xf32, #tpu.memory_space<vmem>>, vector<8x32xf32>
      tpu.vector_store %arg16[%c0_128, %c0_129], %171 {strides = array<i32>} : memref<8x32xf32, #tpu.memory_space<vmem>>, vector<8x32xf32>,
    } else {
    }
    %c0_3 = arith.constant 0 : index
    %c0_4 = arith.constant 0 : index
    %c0_5 = arith.constant 0 : index
    %5 = vector.load %arg4[%c0_3, %c0_4, %c0_5] : memref<1x16x32xf32, #tpu.memory_space<vmem>>, vector<1x16x32xf32>
    %6 = vector.shape_cast %5 : vector<1x16x32xf32> to vector<16x32xf32>
    %c0_6 = arith.constant 0 : index
    %c0_7 = arith.constant 0 : index
    %7 = vector.load %arg7[%c0_6, %c0_7] : memref<32x32xf32, #tpu.memory_space<vmem>>, vector<32x32xf32>
    %cst = arith.constant dense<0.000000e+00> : vector<16x32xf32>
    %8 = tpu.matmul %6, %7, %cst {dimension_numbers = #tpu.dot_dimension_numbers<[1], [0], [0], [1], [0, 0, 1, 1], [], []>} : vector<16x32xf32>, vector<32x32xf32>, vector<16x32xf32> -> vector<16x32xf32>
    %c0_8 = arith.constant 0 : index
    %c0_9 = arith.constant 0 : index
    %c0_10 = arith.constant 0 : index
    %9 = vector.load %arg5[%c0_8, %c0_9, %c0_10] : memref<1x16x32xf32, #tpu.memory_space<vmem>>, vector<1x16x32xf32>
    %10 = vector.shape_cast %9 : vector<1x16x32xf32> to vector<16x32xf32>
    %c0_11 = arith.constant 0 : index
    %c0_12 = arith.constant 0 : index
    %11 = vector.load %arg8[%c0_11, %c0_12] : memref<32x32xf32, #tpu.memory_space<vmem>>, vector<32x32xf32>
    %cst_13 = arith.constant dense<0.000000e+00> : vector<16x32xf32>
    %12 = tpu.matmul %10, %11, %cst_13 {dimension_numbers = #tpu.dot_dimension_numbers<[1], [0], [0], [1], [0, 0, 1, 1], [], []>} : vector<16x32xf32>, vector<32x32xf32>, vector<16x32xf32> -> vector<16x32xf32>
    %c0_14 = arith.constant 0 : index
    %c0_15 = arith.constant 0 : index
    %13 = vector.load %arg13[%c0_14, %c0_15] : memref<8x32xf32, #tpu.memory_space<vmem>>, vector<8x8xf32>
    %14 = vector.extract_strided_slice %8 {offsets = [0, 0], sizes = [16, 8], strides = [1, 1]} : vector<16x32xf32> to vector<16x8xf32>
    %15 = vector.extract_strided_slice %12 {offsets = [0, 0], sizes = [16, 8], strides = [1, 1]} : vector<16x32xf32> to vector<16x8xf32>
    %cst_16 = arith.constant dense<0.000000e+00> : vector<8x16xf32>
    %16 = tpu.matmul %13, %14, %cst_16 {dimension_numbers = #tpu.dot_dimension_numbers<[1], [1], [0], [0], [0, 0, 1, 0], [], []>} : vector<8x8xf32>, vector<16x8xf32>, vector<8x16xf32> -> vector<8x16xf32>
    %c0_17 = arith.constant 0 : index
    %c0_18 = arith.constant 0 : index
    %c0_19 = arith.constant 0 : index
    %17 = vector.load %arg14[%c0_17, %c0_18, %c0_19] : memref<4x8x1xf32, #tpu.memory_space<vmem>>, vector<1x8x1xf32>
    %18 = vector.shape_cast %17 : vector<1x8x1xf32> to vector<8x1xf32>
    %cst_20 = arith.constant dense<0xFF800000> : vector<8xf32>
    %19 = vector.multi_reduction <maximumf>, %16, %cst_20 [1] : vector<8x16xf32> to vector<8xf32>
    %20 = vector.shape_cast %19 : vector<8xf32> to vector<8x1xf32>
    %21 = arith.maximumf %18, %20 : vector<8x1xf32>
    %22 = arith.subf %18, %21 : vector<8x1xf32>
    %23 = math.exp %22 : vector<8x1xf32>
    %24 = vector.broadcast %21 : vector<8x1xf32> to vector<8x16xf32>
    %25 = arith.subf %16, %24 : vector<8x16xf32>
    %26 = math.exp %25 : vector<8x16xf32>
    %c0_21 = arith.constant 0 : index
    %c0_22 = arith.constant 0 : index
    %c0_23 = arith.constant 0 : index
    %27 = vector.load %arg15[%c0_21, %c0_22, %c0_23] : memref<4x8x1xf32, #tpu.memory_space<vmem>>, vector<1x8x1xf32>
    %28 = vector.shape_cast %27 : vector<1x8x1xf32> to vector<8x1xf32>
    %29 = arith.mulf %23, %28 : vector<8x1xf32>
    %cst_24 = arith.constant dense<0.000000e+00> : vector<8xf32>
    %30 = vector.multi_reduction <add>, %26, %cst_24 [1] : vector<8x16xf32> to vector<8xf32>
    %31 = vector.shape_cast %30 : vector<8xf32> to vector<8x1xf32>
    %32 = arith.addf %29, %31 : vector<8x1xf32>
    %c0_25 = arith.constant 0 : index
    %c0_26 = arith.constant 0 : index
    %33 = vector.load %arg16[%c0_25, %c0_26] : memref<8x32xf32, #tpu.memory_space<vmem>>, vector<8x8xf32>
    %34 = vector.broadcast %23 : vector<8x1xf32> to vector<8x8xf32>
    %35 = arith.mulf %34, %33 : vector<8x8xf32>
    %cst_27 = arith.constant dense<0.000000e+00> : vector<8x8xf32>
    %36 = tpu.matmul %26, %15, %cst_27 {dimension_numbers = #tpu.dot_dimension_numbers<[1], [0], [0], [1], [0, 0, 1, 1], [], []>} : vector<8x16xf32>, vector<16x8xf32>, vector<8x8xf32> -> vector<8x8xf32>
    %37 = arith.addf %35, %36 : vector<8x8xf32>
    %c0_28 = arith.constant 0 : index
    %c0_29 = arith.constant 0 : index
    %38 = vector.load %arg16[%c0_28, %c0_29] : memref<8x32xf32, #tpu.memory_space<vmem>>, vector<8x8xf32>
    tpu.vector_store %arg16[%c0_28, %c0_29], %37 {strides = array<i32>} : memref<8x32xf32, #tpu.memory_space<vmem>>, vector<8x8xf32>,
    %c0_30 = arith.constant 0 : index
    %c0_31 = arith.constant 0 : index
    %c0_32 = arith.constant 0 : index
    %39 = vector.load %arg14[%c0_30, %c0_31, %c0_32] : memref<4x8x1xf32, #tpu.memory_space<vmem>>, vector<1x8x1xf32>
    %40 = vector.shape_cast %39 : vector<1x8x1xf32> to vector<8x1xf32>
    %41 = vector.shape_cast %21 : vector<8x1xf32> to vector<1x8x1xf32>
    tpu.vector_store %arg14[%c0_30, %c0_31, %c0_32], %41 {strides = array<i32>} : memref<4x8x1xf32, #tpu.memory_space<vmem>>, vector<1x8x1xf32>,
    %c0_33 = arith.constant 0 : index
    %c0_34 = arith.constant 0 : index
    %c0_35 = arith.constant 0 : index
    %42 = vector.load %arg15[%c0_33, %c0_34, %c0_35] : memref<4x8x1xf32, #tpu.memory_space<vmem>>, vector<1x8x1xf32>
    %43 = vector.shape_cast %42 : vector<1x8x1xf32> to vector<8x1xf32>
    %44 = vector.shape_cast %32 : vector<8x1xf32> to vector<1x8x1xf32>
    tpu.vector_store %arg15[%c0_33, %c0_34, %c0_35], %44 {strides = array<i32>} : memref<4x8x1xf32, #tpu.memory_space<vmem>>, vector<1x8x1xf32>,
    %45 = vector.broadcast %32 : vector<8x1xf32> to vector<8x16xf32>
    %46 = arith.divf %26, %45 : vector<8x16xf32>
    %c0_36 = arith.constant 0 : index
    %c0_37 = arith.constant 0 : index
    %c0_38 = arith.constant 0 : index
    %c0_39 = arith.constant 0 : index
    %47 = vector.load %arg12[%c0_36, %c0_37, %c0_38, %c0_39] : memref<1x4x8x16xf32, #tpu.memory_space<vmem>>, vector<1x1x8x16xf32>
    %48 = vector.shape_cast %47 : vector<1x1x8x16xf32> to vector<8x16xf32>
    %49 = vector.shape_cast %46 : vector<8x16xf32> to vector<1x1x8x16xf32>
    tpu.vector_store %arg12[%c0_36, %c0_37, %c0_38, %c0_39], %49 {strides = array<i32>} : memref<1x4x8x16xf32, #tpu.memory_space<vmem>>, vector<1x1x8x16xf32>,
    %c0_40 = arith.constant 0 : index
    %c8 = arith.constant 8 : index
    %50 = vector.load %arg13[%c0_40, %c8] : memref<8x32xf32, #tpu.memory_space<vmem>>, vector<8x8xf32>
    %51 = vector.extract_strided_slice %8 {offsets = [0, 8], sizes = [16, 8], strides = [1, 1]} : vector<16x32xf32> to vector<16x8xf32>
    %52 = vector.extract_strided_slice %12 {offsets = [0, 8], sizes = [16, 8], strides = [1, 1]} : vector<16x32xf32> to vector<16x8xf32>
    %cst_41 = arith.constant dense<0.000000e+00> : vector<8x16xf32>
    %53 = tpu.matmul %50, %51, %cst_41 {dimension_numbers = #tpu.dot_dimension_numbers<[1], [1], [0], [0], [0, 0, 1, 0], [], []>} : vector<8x8xf32>, vector<16x8xf32>, vector<8x16xf32> -> vector<8x16xf32>
    %c1 = arith.constant 1 : index
    %c0_42 = arith.constant 0 : index
    %c0_43 = arith.constant 0 : index
    %54 = vector.load %arg14[%c1, %c0_42, %c0_43] : memref<4x8x1xf32, #tpu.memory_space<vmem>>, vector<1x8x1xf32>
    %55 = vector.shape_cast %54 : vector<1x8x1xf32> to vector<8x1xf32>
    %cst_44 = arith.constant dense<0xFF800000> : vector<8xf32>
    %56 = vector.multi_reduction <maximumf>, %53, %cst_44 [1] : vector<8x16xf32> to vector<8xf32>
    %57 = vector.shape_cast %56 : vector<8xf32> to vector<8x1xf32>
    %58 = arith.maximumf %55, %57 : vector<8x1xf32>
    %59 = arith.subf %55, %58 : vector<8x1xf32>
    %60 = math.exp %59 : vector<8x1xf32>
    %61 = vector.broadcast %58 : vector<8x1xf32> to vector<8x16xf32>
    %62 = arith.subf %53, %61 : vector<8x16xf32>
    %63 = math.exp %62 : vector<8x16xf32>
    %c1_45 = arith.constant 1 : index
    %c0_46 = arith.constant 0 : index
    %c0_47 = arith.constant 0 : index
    %64 = vector.load %arg15[%c1_45, %c0_46, %c0_47] : memref<4x8x1xf32, #tpu.memory_space<vmem>>, vector<1x8x1xf32>
    %65 = vector.shape_cast %64 : vector<1x8x1xf32> to vector<8x1xf32>
    %66 = arith.mulf %60, %65 : vector<8x1xf32>
    %cst_48 = arith.constant dense<0.000000e+00> : vector<8xf32>
    %67 = vector.multi_reduction <add>, %63, %cst_48 [1] : vector<8x16xf32> to vector<8xf32>
    %68 = vector.shape_cast %67 : vector<8xf32> to vector<8x1xf32>
    %69 = arith.addf %66, %68 : vector<8x1xf32>
    %c0_49 = arith.constant 0 : index
    %c8_50 = arith.constant 8 : index
    %70 = vector.load %arg16[%c0_49, %c8_50] : memref<8x32xf32, #tpu.memory_space<vmem>>, vector<8x8xf32>
    %71 = vector.broadcast %60 : vector<8x1xf32> to vector<8x8xf32>
    %72 = arith.mulf %71, %70 : vector<8x8xf32>
    %cst_51 = arith.constant dense<0.000000e+00> : vector<8x8xf32>
    %73 = tpu.matmul %63, %52, %cst_51 {dimension_numbers = #tpu.dot_dimension_numbers<[1], [0], [0], [1], [0, 0, 1, 1], [], []>} : vector<8x16xf32>, vector<16x8xf32>, vector<8x8xf32> -> vector<8x8xf32>
    %74 = arith.addf %72, %73 : vector<8x8xf32>
    %c0_52 = arith.constant 0 : index
    %c8_53 = arith.constant 8 : index
    %75 = vector.load %arg16[%c0_52, %c8_53] : memref<8x32xf32, #tpu.memory_space<vmem>>, vector<8x8xf32>
    tpu.vector_store %arg16[%c0_52, %c8_53], %74 {strides = array<i32>} : memref<8x32xf32, #tpu.memory_space<vmem>>, vector<8x8xf32>,
    %c1_54 = arith.constant 1 : index
    %c0_55 = arith.constant 0 : index
    %c0_56 = arith.constant 0 : index
    %76 = vector.load %arg14[%c1_54, %c0_55, %c0_56] : memref<4x8x1xf32, #tpu.memory_space<vmem>>, vector<1x8x1xf32>
    %77 = vector.shape_cast %76 : vector<1x8x1xf32> to vector<8x1xf32>
    %78 = vector.shape_cast %58 : vector<8x1xf32> to vector<1x8x1xf32>
    tpu.vector_store %arg14[%c1_54, %c0_55, %c0_56], %78 {strides = array<i32>} : memref<4x8x1xf32, #tpu.memory_space<vmem>>, vector<1x8x1xf32>,
    %c1_57 = arith.constant 1 : index
    %c0_58 = arith.constant 0 : index
    %c0_59 = arith.constant 0 : index
    %79 = vector.load %arg15[%c1_57, %c0_58, %c0_59] : memref<4x8x1xf32, #tpu.memory_space<vmem>>, vector<1x8x1xf32>
    %80 = vector.shape_cast %79 : vector<1x8x1xf32> to vector<8x1xf32>
    %81 = vector.shape_cast %69 : vector<8x1xf32> to vector<1x8x1xf32>
    tpu.vector_store %arg15[%c1_57, %c0_58, %c0_59], %81 {strides = array<i32>} : memref<4x8x1xf32, #tpu.memory_space<vmem>>, vector<1x8x1xf32>,
    %82 = vector.broadcast %69 : vector<8x1xf32> to vector<8x16xf32>
    %83 = arith.divf %63, %82 : vector<8x16xf32>
    %c0_60 = arith.constant 0 : index
    %c1_61 = arith.constant 1 : index
    %c0_62 = arith.constant 0 : index
    %c0_63 = arith.constant 0 : index
    %84 = vector.load %arg12[%c0_60, %c1_61, %c0_62, %c0_63] : memref<1x4x8x16xf32, #tpu.memory_space<vmem>>, vector<1x1x8x16xf32>
    %85 = vector.shape_cast %84 : vector<1x1x8x16xf32> to vector<8x16xf32>
    %86 = vector.shape_cast %83 : vector<8x16xf32> to vector<1x1x8x16xf32>
    tpu.vector_store %arg12[%c0_60, %c1_61, %c0_62, %c0_63], %86 {strides = array<i32>} : memref<1x4x8x16xf32, #tpu.memory_space<vmem>>, vector<1x1x8x16xf32>,
    %c0_64 = arith.constant 0 : index
    %c16 = arith.constant 16 : index
    %87 = vector.load %arg13[%c0_64, %c16] : memref<8x32xf32, #tpu.memory_space<vmem>>, vector<8x8xf32>
    %88 = vector.extract_strided_slice %8 {offsets = [0, 16], sizes = [16, 8], strides = [1, 1]} : vector<16x32xf32> to vector<16x8xf32>
    %89 = vector.extract_strided_slice %12 {offsets = [0, 16], sizes = [16, 8], strides = [1, 1]} : vector<16x32xf32> to vector<16x8xf32>
    %cst_65 = arith.constant dense<0.000000e+00> : vector<8x16xf32>
    %90 = tpu.matmul %87, %88, %cst_65 {dimension_numbers = #tpu.dot_dimension_numbers<[1], [1], [0], [0], [0, 0, 1, 0], [], []>} : vector<8x8xf32>, vector<16x8xf32>, vector<8x16xf32> -> vector<8x16xf32>
    %c2 = arith.constant 2 : index
    %c0_66 = arith.constant 0 : index
    %c0_67 = arith.constant 0 : index
    %91 = vector.load %arg14[%c2, %c0_66, %c0_67] : memref<4x8x1xf32, #tpu.memory_space<vmem>>, vector<1x8x1xf32>
    %92 = vector.shape_cast %91 : vector<1x8x1xf32> to vector<8x1xf32>
    %cst_68 = arith.constant dense<0xFF800000> : vector<8xf32>
    %93 = vector.multi_reduction <maximumf>, %90, %cst_68 [1] : vector<8x16xf32> to vector<8xf32>
    %94 = vector.shape_cast %93 : vector<8xf32> to vector<8x1xf32>
    %95 = arith.maximumf %92, %94 : vector<8x1xf32>
    %96 = arith.subf %92, %95 : vector<8x1xf32>
    %97 = math.exp %96 : vector<8x1xf32>
    %98 = vector.broadcast %95 : vector<8x1xf32> to vector<8x16xf32>
    %99 = arith.subf %90, %98 : vector<8x16xf32>
    %100 = math.exp %99 : vector<8x16xf32>
    %c2_69 = arith.constant 2 : index
    %c0_70 = arith.constant 0 : index
    %c0_71 = arith.constant 0 : index
    %101 = vector.load %arg15[%c2_69, %c0_70, %c0_71] : memref<4x8x1xf32, #tpu.memory_space<vmem>>, vector<1x8x1xf32>
    %102 = vector.shape_cast %101 : vector<1x8x1xf32> to vector<8x1xf32>
    %103 = arith.mulf %97, %102 : vector<8x1xf32>
    %cst_72 = arith.constant dense<0.000000e+00> : vector<8xf32>
    %104 = vector.multi_reduction <add>, %100, %cst_72 [1] : vector<8x16xf32> to vector<8xf32>
    %105 = vector.shape_cast %104 : vector<8xf32> to vector<8x1xf32>
    %106 = arith.addf %103, %105 : vector<8x1xf32>
    %c0_73 = arith.constant 0 : index
    %c16_74 = arith.constant 16 : index
    %107 = vector.load %arg16[%c0_73, %c16_74] : memref<8x32xf32, #tpu.memory_space<vmem>>, vector<8x8xf32>
    %108 = vector.broadcast %97 : vector<8x1xf32> to vector<8x8xf32>
    %109 = arith.mulf %108, %107 : vector<8x8xf32>
    %cst_75 = arith.constant dense<0.000000e+00> : vector<8x8xf32>
    %110 = tpu.matmul %100, %89, %cst_75 {dimension_numbers = #tpu.dot_dimension_numbers<[1], [0], [0], [1], [0, 0, 1, 1], [], []>} : vector<8x16xf32>, vector<16x8xf32>, vector<8x8xf32> -> vector<8x8xf32>
    %111 = arith.addf %109, %110 : vector<8x8xf32>
    %c0_76 = arith.constant 0 : index
    %c16_77 = arith.constant 16 : index
    %112 = vector.load %arg16[%c0_76, %c16_77] : memref<8x32xf32, #tpu.memory_space<vmem>>, vector<8x8xf32>
    tpu.vector_store %arg16[%c0_76, %c16_77], %111 {strides = array<i32>} : memref<8x32xf32, #tpu.memory_space<vmem>>, vector<8x8xf32>,
    %c2_78 = arith.constant 2 : index
    %c0_79 = arith.constant 0 : index
    %c0_80 = arith.constant 0 : index
    %113 = vector.load %arg14[%c2_78, %c0_79, %c0_80] : memref<4x8x1xf32, #tpu.memory_space<vmem>>, vector<1x8x1xf32>
    %114 = vector.shape_cast %113 : vector<1x8x1xf32> to vector<8x1xf32>
    %115 = vector.shape_cast %95 : vector<8x1xf32> to vector<1x8x1xf32>
    tpu.vector_store %arg14[%c2_78, %c0_79, %c0_80], %115 {strides = array<i32>} : memref<4x8x1xf32, #tpu.memory_space<vmem>>, vector<1x8x1xf32>,
    %c2_81 = arith.constant 2 : index
    %c0_82 = arith.constant 0 : index
    %c0_83 = arith.constant 0 : index
    %116 = vector.load %arg15[%c2_81, %c0_82, %c0_83] : memref<4x8x1xf32, #tpu.memory_space<vmem>>, vector<1x8x1xf32>
    %117 = vector.shape_cast %116 : vector<1x8x1xf32> to vector<8x1xf32>
    %118 = vector.shape_cast %106 : vector<8x1xf32> to vector<1x8x1xf32>
    tpu.vector_store %arg15[%c2_81, %c0_82, %c0_83], %118 {strides = array<i32>} : memref<4x8x1xf32, #tpu.memory_space<vmem>>, vector<1x8x1xf32>,
    %119 = vector.broadcast %106 : vector<8x1xf32> to vector<8x16xf32>
    %120 = arith.divf %100, %119 : vector<8x16xf32>
    %c0_84 = arith.constant 0 : index
    %c2_85 = arith.constant 2 : index
    %c0_86 = arith.constant 0 : index
    %c0_87 = arith.constant 0 : index
    %121 = vector.load %arg12[%c0_84, %c2_85, %c0_86, %c0_87] : memref<1x4x8x16xf32, #tpu.memory_space<vmem>>, vector<1x1x8x16xf32>
    %122 = vector.shape_cast %121 : vector<1x1x8x16xf32> to vector<8x16xf32>
    %123 = vector.shape_cast %120 : vector<8x16xf32> to vector<1x1x8x16xf32>
    tpu.vector_store %arg12[%c0_84, %c2_85, %c0_86, %c0_87], %123 {strides = array<i32>} : memref<1x4x8x16xf32, #tpu.memory_space<vmem>>, vector<1x1x8x16xf32>,
    %c0_88 = arith.constant 0 : index
    %c24 = arith.constant 24 : index
    %124 = vector.load %arg13[%c0_88, %c24] : memref<8x32xf32, #tpu.memory_space<vmem>>, vector<8x8xf32>
    %125 = vector.extract_strided_slice %8 {offsets = [0, 24], sizes = [16, 8], strides = [1, 1]} : vector<16x32xf32> to vector<16x8xf32>
    %126 = vector.extract_strided_slice %12 {offsets = [0, 24], sizes = [16, 8], strides = [1, 1]} : vector<16x32xf32> to vector<16x8xf32>
    %cst_89 = arith.constant dense<0.000000e+00> : vector<8x16xf32>
    %127 = tpu.matmul %124, %125, %cst_89 {dimension_numbers = #tpu.dot_dimension_numbers<[1], [1], [0], [0], [0, 0, 1, 0], [], []>} : vector<8x8xf32>, vector<16x8xf32>, vector<8x16xf32> -> vector<8x16xf32>
    %c3 = arith.constant 3 : index
    %c0_90 = arith.constant 0 : index
    %c0_91 = arith.constant 0 : index
    %128 = vector.load %arg14[%c3, %c0_90, %c0_91] : memref<4x8x1xf32, #tpu.memory_space<vmem>>, vector<1x8x1xf32>
    %129 = vector.shape_cast %128 : vector<1x8x1xf32> to vector<8x1xf32>
    %cst_92 = arith.constant dense<0xFF800000> : vector<8xf32>
    %130 = vector.multi_reduction <maximumf>, %127, %cst_92 [1] : vector<8x16xf32> to vector<8xf32>
    %131 = vector.shape_cast %130 : vector<8xf32> to vector<8x1xf32>
    %132 = arith.maximumf %129, %131 : vector<8x1xf32>
    %133 = arith.subf %129, %132 : vector<8x1xf32>
    %134 = math.exp %133 : vector<8x1xf32>
    %135 = vector.broadcast %132 : vector<8x1xf32> to vector<8x16xf32>
    %136 = arith.subf %127, %135 : vector<8x16xf32>
    %137 = math.exp %136 : vector<8x16xf32>
    %c3_93 = arith.constant 3 : index
    %c0_94 = arith.constant 0 : index
    %c0_95 = arith.constant 0 : index
    %138 = vector.load %arg15[%c3_93, %c0_94, %c0_95] : memref<4x8x1xf32, #tpu.memory_space<vmem>>, vector<1x8x1xf32>
    %139 = vector.shape_cast %138 : vector<1x8x1xf32> to vector<8x1xf32>
    %140 = arith.mulf %134, %139 : vector<8x1xf32>
    %cst_96 = arith.constant dense<0.000000e+00> : vector<8xf32>
    %141 = vector.multi_reduction <add>, %137, %cst_96 [1] : vector<8x16xf32> to vector<8xf32>
    %142 = vector.shape_cast %141 : vector<8xf32> to vector<8x1xf32>
    %143 = arith.addf %140, %142 : vector<8x1xf32>
    %c0_97 = arith.constant 0 : index
    %c24_98 = arith.constant 24 : index
    %144 = vector.load %arg16[%c0_97, %c24_98] : memref<8x32xf32, #tpu.memory_space<vmem>>, vector<8x8xf32>
    %145 = vector.broadcast %134 : vector<8x1xf32> to vector<8x8xf32>
    %146 = arith.mulf %145, %144 : vector<8x8xf32>
    %cst_99 = arith.constant dense<0.000000e+00> : vector<8x8xf32>
    %147 = tpu.matmul %137, %126, %cst_99 {dimension_numbers = #tpu.dot_dimension_numbers<[1], [0], [0], [1], [0, 0, 1, 1], [], []>} : vector<8x16xf32>, vector<16x8xf32>, vector<8x8xf32> -> vector<8x8xf32>
    %148 = arith.addf %146, %147 : vector<8x8xf32>
    %c0_100 = arith.constant 0 : index
    %c24_101 = arith.constant 24 : index
    %149 = vector.load %arg16[%c0_100, %c24_101] : memref<8x32xf32, #tpu.memory_space<vmem>>, vector<8x8xf32>
    tpu.vector_store %arg16[%c0_100, %c24_101], %148 {strides = array<i32>} : memref<8x32xf32, #tpu.memory_space<vmem>>, vector<8x8xf32>,
    %c3_102 = arith.constant 3 : index
    %c0_103 = arith.constant 0 : index
    %c0_104 = arith.constant 0 : index
    %150 = vector.load %arg14[%c3_102, %c0_103, %c0_104] : memref<4x8x1xf32, #tpu.memory_space<vmem>>, vector<1x8x1xf32>
    %151 = vector.shape_cast %150 : vector<1x8x1xf32> to vector<8x1xf32>
    %152 = vector.shape_cast %132 : vector<8x1xf32> to vector<1x8x1xf32>
    tpu.vector_store %arg14[%c3_102, %c0_103, %c0_104], %152 {strides = array<i32>} : memref<4x8x1xf32, #tpu.memory_space<vmem>>, vector<1x8x1xf32>,
    %c3_105 = arith.constant 3 : index
    %c0_106 = arith.constant 0 : index
    %c0_107 = arith.constant 0 : index
    %153 = vector.load %arg15[%c3_105, %c0_106, %c0_107] : memref<4x8x1xf32, #tpu.memory_space<vmem>>, vector<1x8x1xf32>
    %154 = vector.shape_cast %153 : vector<1x8x1xf32> to vector<8x1xf32>
    %155 = vector.shape_cast %143 : vector<8x1xf32> to vector<1x8x1xf32>
    tpu.vector_store %arg15[%c3_105, %c0_106, %c0_107], %155 {strides = array<i32>} : memref<4x8x1xf32, #tpu.memory_space<vmem>>, vector<1x8x1xf32>,
    %156 = vector.broadcast %143 : vector<8x1xf32> to vector<8x16xf32>
    %157 = arith.divf %137, %156 : vector<8x16xf32>
    %c0_108 = arith.constant 0 : index
    %c3_109 = arith.constant 3 : index
    %c0_110 = arith.constant 0 : index
    %c0_111 = arith.constant 0 : index
    %158 = vector.load %arg12[%c0_108, %c3_109, %c0_110, %c0_111] : memref<1x4x8x16xf32, #tpu.memory_space<vmem>>, vector<1x1x8x16xf32>
    %159 = vector.shape_cast %158 : vector<1x1x8x16xf32> to vector<8x16xf32>
    %160 = vector.shape_cast %157 : vector<8x16xf32> to vector<1x1x8x16xf32>
    tpu.vector_store %arg12[%c0_108, %c3_109, %c0_110, %c0_111], %160 {strides = array<i32>} : memref<1x4x8x16xf32, #tpu.memory_space<vmem>>, vector<1x1x8x16xf32>,
    %c0_i32_112 = arith.constant 0 : i32
    %161 = arith.cmpi eq, %arg2, %c0_i32_112 : i32
    %162 = arith.extui %161 : i1 to i32
    %c0_i32_113 = arith.constant 0 : i32
    %163 = arith.cmpi ne, %162, %c0_i32_113 : i32
    scf.if %163 {
      %c0_114 = arith.constant 0 : index
      %c0_115 = arith.constant 0 : index
      %164 = vector.load %arg16[%c0_114, %c0_115] : memref<8x32xf32, #tpu.memory_space<vmem>>, vector<8x8xf32>
      %c0_116 = arith.constant 0 : index
      %c0_117 = arith.constant 0 : index
      %c0_118 = arith.constant 0 : index
      %165 = vector.load %arg15[%c0_116, %c0_117, %c0_118] : memref<4x8x1xf32, #tpu.memory_space<vmem>>, vector<1x8x1xf32>
      %166 = vector.shape_cast %165 : vector<1x8x1xf32> to vector<8x1xf32>
      %167 = tpu.reciprocal %166 {approx = true} : vector<8x1xf32> -> vector<8x1xf32>
      %168 = vector.broadcast %167 : vector<8x1xf32> to vector<8x8xf32>
      %169 = arith.mulf %164, %168 : vector<8x8xf32>
      %c0_119 = arith.constant 0 : index
      %c0_120 = arith.constant 0 : index
      %170 = vector.load %arg16[%c0_119, %c0_120] : memref<8x32xf32, #tpu.memory_space<vmem>>, vector<8x8xf32>
      tpu.vector_store %arg16[%c0_119, %c0_120], %169 {strides = array<i32>} : memref<8x32xf32, #tpu.memory_space<vmem>>, vector<8x8xf32>,
      %c0_121 = arith.constant 0 : index
      %c8_122 = arith.constant 8 : index
      %171 = vector.load %arg16[%c0_121, %c8_122] : memref<8x32xf32, #tpu.memory_space<vmem>>, vector<8x8xf32>
      %c1_123 = arith.constant 1 : index
      %c0_124 = arith.constant 0 : index
      %c0_125 = arith.constant 0 : index
      %172 = vector.load %arg15[%c1_123, %c0_124, %c0_125] : memref<4x8x1xf32, #tpu.memory_space<vmem>>, vector<1x8x1xf32>
      %173 = vector.shape_cast %172 : vector<1x8x1xf32> to vector<8x1xf32>
      %174 = tpu.reciprocal %173 {approx = true} : vector<8x1xf32> -> vector<8x1xf32>
      %175 = vector.broadcast %174 : vector<8x1xf32> to vector<8x8xf32>
      %176 = arith.mulf %171, %175 : vector<8x8xf32>
      %c0_126 = arith.constant 0 : index
      %c8_127 = arith.constant 8 : index
      %177 = vector.load %arg16[%c0_126, %c8_127] : memref<8x32xf32, #tpu.memory_space<vmem>>, vector<8x8xf32>
      tpu.vector_store %arg16[%c0_126, %c8_127], %176 {strides = array<i32>} : memref<8x32xf32, #tpu.memory_space<vmem>>, vector<8x8xf32>,
      %c0_128 = arith.constant 0 : index
      %c16_129 = arith.constant 16 : index
      %178 = vector.load %arg16[%c0_128, %c16_129] : memref<8x32xf32, #tpu.memory_space<vmem>>, vector<8x8xf32>
      %c2_130 = arith.constant 2 : index
      %c0_131 = arith.constant 0 : index
      %c0_132 = arith.constant 0 : index
      %179 = vector.load %arg15[%c2_130, %c0_131, %c0_132] : memref<4x8x1xf32, #tpu.memory_space<vmem>>, vector<1x8x1xf32>
      %180 = vector.shape_cast %179 : vector<1x8x1xf32> to vector<8x1xf32>
      %181 = tpu.reciprocal %180 {approx = true} : vector<8x1xf32> -> vector<8x1xf32>
      %182 = vector.broadcast %181 : vector<8x1xf32> to vector<8x8xf32>
      %183 = arith.mulf %178, %182 : vector<8x8xf32>
      %c0_133 = arith.constant 0 : index
      %c16_134 = arith.constant 16 : index
      %184 = vector.load %arg16[%c0_133, %c16_134] : memref<8x32xf32, #tpu.memory_space<vmem>>, vector<8x8xf32>
      tpu.vector_store %arg16[%c0_133, %c16_134], %183 {strides = array<i32>} : memref<8x32xf32, #tpu.memory_space<vmem>>, vector<8x8xf32>,
      %c0_135 = arith.constant 0 : index
      %c24_136 = arith.constant 24 : index
      %185 = vector.load %arg16[%c0_135, %c24_136] : memref<8x32xf32, #tpu.memory_space<vmem>>, vector<8x8xf32>
      %c3_137 = arith.constant 3 : index
      %c0_138 = arith.constant 0 : index
      %c0_139 = arith.constant 0 : index
      %186 = vector.load %arg15[%c3_137, %c0_138, %c0_139] : memref<4x8x1xf32, #tpu.memory_space<vmem>>, vector<1x8x1xf32>
      %187 = vector.shape_cast %186 : vector<1x8x1xf32> to vector<8x1xf32>
      %188 = tpu.reciprocal %187 {approx = true} : vector<8x1xf32> -> vector<8x1xf32>
      %189 = vector.broadcast %188 : vector<8x1xf32> to vector<8x8xf32>
      %190 = arith.mulf %185, %189 : vector<8x8xf32>
      %c0_140 = arith.constant 0 : index
      %c24_141 = arith.constant 24 : index
      %191 = vector.load %arg16[%c0_140, %c24_141] : memref<8x32xf32, #tpu.memory_space<vmem>>, vector<8x8xf32>
      tpu.vector_store %arg16[%c0_140, %c24_141], %190 {strides = array<i32>} : memref<8x32xf32, #tpu.memory_space<vmem>>, vector<8x8xf32>,
      %c0_142 = arith.constant 0 : index
      %c0_143 = arith.constant 0 : index
      %192 = vector.load %arg16[%c0_142, %c0_143] : memref<8x32xf32, #tpu.memory_space<vmem>>, vector<8x32xf32>
      %193 = arith.addf %192, %1 : vector<8x32xf32>
      %cst_144 = arith.constant dense<0.000000e+00> : vector<8xf32>
      %194 = vector.multi_reduction <add>, %193, %cst_144 [1] : vector<8x32xf32> to vector<8xf32>
      %195 = vector.shape_cast %194 : vector<8xf32> to vector<8x1xf32>
      %cst_145 = arith.constant 3.125000e-02 : f32
      %196 = vector.broadcast %cst_145 : f32 to vector<8x1xf32>
      %197 = arith.mulf %195, %196 : vector<8x1xf32>
      %198 = arith.mulf %193, %193 : vector<8x32xf32>
      %cst_146 = arith.constant dense<0.000000e+00> : vector<8xf32>
      %199 = vector.multi_reduction <add>, %198, %cst_146 [1] : vector<8x32xf32> to vector<8xf32>
      %200 = vector.shape_cast %199 : vector<8xf32> to vector<8x1xf32>
      %cst_147 = arith.constant 3.125000e-02 : f32
      %201 = vector.broadcast %cst_147 : f32 to vector<8x1xf32>
      %202 = arith.mulf %200, %201 : vector<8x1xf32>
      %203 = arith.mulf %197, %197 : vector<8x1xf32>
      %204 = arith.subf %202, %203 : vector<8x1xf32>
      %cst_148 = arith.constant 0.000000e+00 : f32
      %205 = vector.broadcast %cst_148 : f32 to vector<8x1xf32>
      %206 = arith.maximumf %204, %205 : vector<8x1xf32>
      %207 = vector.broadcast %197 : vector<8x1xf32> to vector<8x32xf32>
      %208 = arith.subf %193, %207 : vector<8x32xf32>
      %cst_149 = arith.constant 9.99999974E-6 : f32
      %209 = vector.broadcast %cst_149 : f32 to vector<8x1xf32>
      %210 = arith.addf %206, %209 : vector<8x1xf32>
      %211 = math.rsqrt %210 : vector<8x1xf32>
      %212 = vector.broadcast %211 : vector<8x1xf32> to vector<8x32xf32>
      %213 = arith.mulf %208, %212 : vector<8x32xf32>
      %c0_150 = arith.constant 0 : index
      %c0_151 = arith.constant 0 : index
      %214 = vector.load %arg9[%c0_150, %c0_151] : memref<1x32xf32, #tpu.memory_space<vmem>>, vector<1x32xf32>
      %215 = vector.broadcast %214 : vector<1x32xf32> to vector<8x32xf32>
      %216 = arith.mulf %213, %215 : vector<8x32xf32>
      %c0_152 = arith.constant 0 : index
      %c0_153 = arith.constant 0 : index
      %217 = vector.load %arg10[%c0_152, %c0_153] : memref<1x32xf32, #tpu.memory_space<vmem>>, vector<1x32xf32>
      %218 = vector.broadcast %217 : vector<1x32xf32> to vector<8x32xf32>
      %219 = arith.addf %216, %218 : vector<8x32xf32>
      %c0_154 = arith.constant 0 : index
      %c0_155 = arith.constant 0 : index
      %c0_156 = arith.constant 0 : index
      %220 = vector.load %arg11[%c0_154, %c0_155, %c0_156] : memref<1x8x32xf32, #tpu.memory_space<vmem>>, vector<1x8x32xf32>
      %221 = vector.shape_cast %220 : vector<1x8x32xf32> to vector<8x32xf32>
      %222 = vector.shape_cast %219 : vector<8x32xf32> to vector<1x8x32xf32>
      tpu.vector_store %arg11[%c0_154, %c0_155, %c0_156], %222 {strides = array<i32>} : memref<1x8x32xf32, #tpu.memory_space<vmem>>, vector<1x8x32xf32>,
    } else {
    }
    return
  }
  func.func @transform_0(%arg0: i32, %arg1: i32, %arg2: i32) -> (i32, i32, i32) {
    %c0_i32 = arith.constant 0 : i32
    %c0_i32_0 = arith.constant 0 : i32
    return %arg0, %arg1, %c0_i32 : i32, i32, i32
  }
  func.func @transform_1(%arg0: i32, %arg1: i32, %arg2: i32) -> (i32, i32, i32) {
    %c0_i32 = arith.constant 0 : i32
    %c0_i32_0 = arith.constant 0 : i32
    return %arg0, %arg2, %c0_i32 : i32, i32, i32
  }
  func.func @transform_2(%arg0: i32, %arg1: i32, %arg2: i32) -> (i32, i32, i32) {
    %c0_i32 = arith.constant 0 : i32
    %c0_i32_0 = arith.constant 0 : i32
    return %arg0, %arg2, %c0_i32 : i32, i32, i32
  }
  func.func @transform_3(%arg0: i32, %arg1: i32, %arg2: i32) -> (i32, i32) {
    %c0_i32 = arith.constant 0 : i32
    %c0_i32_0 = arith.constant 0 : i32
    %c0_i32_1 = arith.constant 0 : i32
    return %c0_i32, %c0_i32_0 : i32, i32
  }
  func.func @transform_4(%arg0: i32, %arg1: i32, %arg2: i32) -> (i32, i32) {
    %c0_i32 = arith.constant 0 : i32
    %c0_i32_0 = arith.constant 0 : i32
    %c0_i32_1 = arith.constant 0 : i32
    return %c0_i32, %c0_i32_0 : i32, i32
  }
  func.func @transform_5(%arg0: i32, %arg1: i32, %arg2: i32) -> (i32, i32) {
    %c0_i32 = arith.constant 0 : i32
    %c0_i32_0 = arith.constant 0 : i32
    %c0_i32_1 = arith.constant 0 : i32
    return %c0_i32, %c0_i32_0 : i32, i32
  }
  func.func @transform_6(%arg0: i32, %arg1: i32, %arg2: i32) -> (i32, i32) {
    %c0_i32 = arith.constant 0 : i32
    %c0_i32_0 = arith.constant 0 : i32
    %c0_i32_1 = arith.constant 0 : i32
    return %c0_i32, %c0_i32_0 : i32, i32
  }
  func.func @transform_7(%arg0: i32, %arg1: i32, %arg2: i32) -> (i32, i32) {
    %c0_i32 = arith.constant 0 : i32
    %c0_i32_0 = arith.constant 0 : i32
    %c0_i32_1 = arith.constant 0 : i32
    return %c0_i32, %c0_i32_0 : i32, i32
  }
  func.func @transform_8(%arg0: i32, %arg1: i32, %arg2: i32) -> (i32, i32, i32) {
    %c0_i32 = arith.constant 0 : i32
    %c0_i32_0 = arith.constant 0 : i32
    return %arg0, %arg1, %c0_i32 : i32, i32, i32
  }
  func.func @transform_9(%arg0: i32, %arg1: i32, %arg2: i32) -> (i32, i32, i32, i32) {
    %c0_i32 = arith.constant 0 : i32
    %c0_i32_0 = arith.constant 0 : i32
    %c0_i32_1 = arith.constant 0 : i32
    return %arg0, %c0_i32, %arg1, %c0_i32_0 : i32, i32, i32, i32
  }
}

</mosaic_0001>

<bundles_post_ra>
// kernel: tpu_custom_call.1
= control target key start
LH: loop header
LB: loop body
LE: loop exit
PB: predicated region body
PF: predicated region fallthrough
CT: control target
= control target key end

     0   :  { %s2604_s0 = inlined_call_operand.hbm [shape: f32[2,16,32], index: 0, kind: input, shape index: {}]   ;;  %s2605_s1 = inlined_call_operand.hbm [shape: f32[2,16,32], index: 1, kind: input, shape index: {}]   ;;  %s2606_s2 = inlined_call_operand.hbm [shape: f32[2,16,32], index: 2, kind: input, shape index: {}]   ;;  %s2607_s3 = inlined_call_operand.hbm [shape: f32[32,32], index: 3, kind: input, shape index: {}]   ;;  %s2608_s4 = inlined_call_operand.hbm [shape: f32[32,32], index: 4, kind: input, shape index: {}]   ;;  %s2609_s5 = inlined_call_operand.hbm [shape: f32[32,32], index: 5, kind: input, shape index: {}]   ;;  %s2610_s6 = inlined_call_operand.vmem [shape: f32[1,32], index: 6, kind: input, shape index: {}]   ;;  %s2611_s7 = inlined_call_operand.vmem [shape: f32[1,32], index: 7, kind: input, shape index: {}]   ;;  %s2612_s8 = inlined_call_operand.hbm [shape: f32[2,16,32], index: 8, kind: output, shape index: {0}]   ;;  %s2613_s9 = inlined_call_operand.hbm [shape: f32[2,4,16,16], index: 9, kind: output, shape index: {1}]  }
   0x1   :  { %2637 = sst [smem:[#allocation37_spill]] %s2605_s1 }
   0x2   :  { %2638 = sst [smem:[#allocation38_spill]] %s2606_s2 }
   0x3   :  { %2639 = sst [smem:[#allocation39_spill]] %s2607_s3 }
   0x4   :  { %2640 = sst [smem:[#allocation40_spill]] %s2608_s4 }
   0x5   :  { %2641 = sst [smem:[#allocation41_spill]] %s2609_s5 }
   0x6   :  { %2642 = sst [smem:[#allocation42_spill]] %s2610_s6 }
   0x7   :  { %2643 = sst [smem:[#allocation43_spill]] %s2611_s7 }
   0x8   :  { %2644 = sst [smem:[#allocation44_spill]] %s2612_s8 }
   0x9   :  { %2645 = sst [smem:[#allocation45_spill]] %s2613_s9 }
   0xa   :  { %15 = vsyncpa [#allocation7], 0 }
   0xb   :  { %17 = vsyncpa [#allocation7 + $0x1], 0 }
   0xc   :  { %18 = vsyncpa [#allocation10], 0 }
   0xd   :  { %20 = vsyncpa [#allocation10 + $0x1], 0 }
   0xe   :  { %21 = vsyncpa [#allocation13], 0 }
   0xf   :  { %22 = vsyncpa [#allocation16], 0 }
  0x10   :  { %23 = vsyncpa [#allocation8], 0 }
  0x11   :  { %25 = vsyncpa [#allocation8 + $0x1], 0 }
  0x12   :  { %26 = vsyncpa [#allocation19], 0 }
  0x13   :  { %28 = vsyncpa [#allocation19 + $0x1], 0  ;;  %s2142_s30 = smov 0   ;;  %s2144_s10 = smov 0  }
  0x14   :  { %s2146_s11 = smov 0   ;;  %s2148_s12 = smov 0  }
  0x15   :  { %s2150_s13 = smov 0   ;;  %s2152_s14 = smov 0  }
  0x16   :  { %s2154_s15 = smov 0   ;;  %s2156_s16 = smov 0  }
  0x17   :  { %s2158_s17 = smov 0   ;;  %s2160_s18 = smov 0  }
  0x18   :  { %s2162_s19 = smov 0  }
  0x19 LB: > { %2646 = sst [smem:[#allocation26_spill]] %s2038_s10  ;;  %s2198_s20 = sadd.s32 4294967295, %s2074_s19   ;;  %s2074_s19 = sphi %s2162_s19, %s34_s19   ;;  %s2070_s18 = sphi %s2160_s18, %s2702_s18   ;;  %s2066_s17 = sphi %s2158_s17, %s2701_s17   ;;  %s2062_s16 = sphi %s2156_s16, %s2700_s16   ;;  %s2058_s15 = sphi %s2154_s15, %s2699_s15   ;;  %s2054_s14 = sphi %s2152_s14, %s2698_s14   ;;  %s2050_s13 = sphi %s2150_s13, %s2697_s13   ;;  %s2046_s12 = sphi %s2148_s12, %s2696_s12   ;;  %s2042_s11 = sphi %s2146_s11, %s2695_s11   ;;  %s2038_s10 = sphi %s2144_s10, %s2694_s10   ;;  %s2034_s30 = sphi %s2142_s30, %s2691_s30  }
  0x1a   : > { %2647 = sst [smem:[#allocation27_spill]] %s2046_s12  ;;  %p1456_p0 = scmp.ge.s32.totalorder %s2074_s19, 1 }
  0x1b   : > { %2648 = sst [smem:[#allocation28_spill]] %s2058_s15  ;;  %p2624_p1 = scmp.eq.s32.totalorder %s2198_s20, 0 }
  0x1c   : > { %2649 = sst [smem:[#allocation29_spill]] %s2062_s16  ;;  %p303_p2 = scmp.lt.s32.totalorder %s2074_s19, 5 }
  0x1d   : > { %2650 = sst [smem:[#allocation30_spill]] %s2198_s20  ;;  %s2076_s25 = smov [#allocation12]  }
  0x1e   : > { %s2651_s3 = sld [smem:[#allocation39_spill]]  ;;  %p2206_p3 = pnand %p1456_p0, %p303_p2 }
  0x1f   : > { %s316_s26 = sshll.u32 %s2076_s25, 4  ;;  %s2615_s28 = smov 128   ;;  %s317_s26 = int_to_ptr.vmem [resolvable:$true] %s316_s26 }
  0x20   : > { %p1535_p4 = pneg %p2206_p3  ;;  %s2617_s29 = smov 8  }
  0x21   : > { %p70_p6 = scmp.eq.s32.totalorder %s2074_s19, 0  ;;  %p97_p7 = scmp.ne.s32.totalorder %s2042_s11, %s2038_s10 }
  0x22   : > { %p2214_p5 = pnand %p1535_p4, %p2624_p1  ;;  %p103_p8 = scmp.ne.s32.totalorder %s2038_s10, %s2034_s30 }
  0x23   : > { %p2625_p9 = scmp.lt.s32.totalorder %s2074_s19, 4  ;;  %p99_p10 = por %p97_p7, %p70_p6 }
  0x24   : > { %s314_s23 = sshll.u32 %s2651_s3, 4  ;;  %s385_s21 = sand.u32 1, %s2074_s19   ;;  %s315_s23 = int_to_ptr.hbm [resolvable:$true] %s314_s23 }
  0x25   : > { %1538 = dma.hbm_to_vmem [thread:$0]  (!%p2214_p5), %s315_s23, 512, %s317_s26, [#allocation13], %s2615_s28, %s2615_s28, %s2617_s29  }
  0x26   : > { %p2234_p11 = por %p103_p8, %p2624_p1  ;;  %s387_s25 = sand.u32 1, %s2042_s11  }
  0x27   : > { %s1511_s3 = sshll.u32 %s2070_s18, 4  ;;  %s1464_s7 = sshll.u32 %s387_s25, 4 }
  0x28   : > { %s2654_s22 = scalar_select %p2234_p11, 1, 0 }
  0x29   : > { %s2656_s1 = sld [smem:[#allocation37_spill]]  ;;  %s389_s30 = scalar_lea.vmem [#allocation9], %s1464_s7 }
  0x2a   : > { %2655 = sst [smem:[#allocation31_spill]] %s2654_s22  ;;  %s399_s28 = sshll.u32 %s389_s30, 4  ;;  %s400_s28 = int_to_ptr.vmem [resolvable:$true] %s399_s28 }
  0x2b   : > { %p2245_p12 = pnand %p2625_p9, %p99_p10  ;;  %s2658_s2 = sld [smem:[#allocation38_spill]] }
  0x2c   : > { %s2252_s22 = scalar_lea.sflag [#allocation10], %s385_s21  ;;  %s2659_s6 = smov 8  }
  0x2d   : > { %s2660_s8 = smov 128   ;;  %s413_s30 = scalar_lea.vmem [#allocation11], %s1464_s7 }
  0x2e   : > { %s2263_s9 = sshll.u32 %s413_s30, 4  ;;  %s2661_s4 = sld [smem:[#allocation40_spill]]  ;;  %s424_s9 = int_to_ptr.vmem [resolvable:$true] %s2263_s9 }
  0x2f   : > { %s396_s23 = scalar_lea.hbm %s2656_s1, %s1511_s3  ;;  %s2662_s5 = sld [smem:[#allocation41_spill]] }
  0x30   : > { %s397_s26 = sshll.u32 %s396_s23, 4  ;;  %s2080_s7 = smov [#allocation15]   ;;  %s398_s26 = int_to_ptr.hbm [resolvable:$true] %s397_s26 }
  0x31   : > { %s420_s25 = scalar_lea.hbm %s2658_s2, %s1511_s3  ;;  %s344_s30 = sshll.u32 %s2080_s7, 4  ;;  %s345_s30 = int_to_ptr.vmem [resolvable:$true] %s344_s30 }
  0x32   : > { %s421_s16 = sshll.u32 %s420_s25, 4  ;;  %s2079_s25 = smov [#allocation14]   ;;  %s2261_s16 = int_to_ptr.hbm [resolvable:$true] %s421_s16 }
  0x33   : > { %1551 = dma.hbm_to_vmem [thread:$0]  (!%p2245_p12), %s398_s26, 256, %s400_s28, %s2252_s22, %s2660_s8, %s2660_s8, %s2659_s6  }
  0x34   : > { %s328_s21 = sshll.u32 %s2661_s4, 4  ;;  %s330_s28 = sshll.u32 %s2079_s25, 4  ;;  %s329_s21 = int_to_ptr.hbm [resolvable:$true] %s328_s21  ;;  %s331_s28 = int_to_ptr.vmem [resolvable:$true] %s330_s28 }
  0x35   : > { %s342_s1 = sshll.u32 %s2662_s5, 4  ;;  %s1455_s23 = sadd.s32 4294967294, %s2074_s19   ;;  %s343_s1 = int_to_ptr.hbm [resolvable:$true] %s342_s1 }
  0x36   : > { %1541 = dma.hbm_to_vmem [thread:$0]  (!%p2214_p5), %s329_s21, 512, %s331_s28, [#allocation13], %s2660_s8, %s2660_s8, %s2659_s6  }
  0x37   : > { %1544 = dma.hbm_to_vmem [thread:$0]  (!%p2214_p5), %s343_s1, 512, %s345_s30, [#allocation16], %s2660_s8, %s2660_s8, %s2659_s6  }
  0x38   : > { %s49_s3 = sadd.s32 1, %s2066_s17  ;;  %s53_s15 = sadd.s32 1, %s2070_s18 }
  0x39   : > { %p51_p13 = scmp.ge.s32.totalorder %s49_s3, 2  ;;  %s62_s25 = sadd.s32 1, %s2054_s14 }
  0x3a   : > { %p69_p0 = scmp.ne.s32.totalorder %s2054_s14, %s2050_s13  ;;  %p75_p2 = scmp.ne.s32.totalorder %s2050_s13, %s2046_s12 }
  0x3b   : > { %s2704_s3 = smov (%p51_p13, %s49_s3), 0  ;;  %s2706_s15 = smov (!%p51_p13, %s53_s15), %s2070_s18 }
  0x3c   : > { %2663 = sst [smem:[#allocation32_spill]] %s2704_s3  ;;  %s58_s27 = ssub.s32 %s2066_s17, %s2704_s3 }
  0x3d   : > { %p2296_p4 = por %p70_p6, %p69_p0  ;;  %p55_p5 = scmp.ge.s32.totalorder %s2706_s15, 2 }
  0x3e   : > { %p2302_p7 = por %p2624_p1, %p75_p2  ;;  %p262_p8 = scmp.eq.s32.totalorder %s2198_s20, 3 }
  0x3f   : > { %p268_p10 = scmp.eq.s32.totalorder %s1455_s23, 3  ;;  %s2708_s15 = smov (%p55_p5, %s2706_s15), 0 }
  0x40   : > { %s2665_s21 = scalar_select %p2302_p7, 1, 0 }
  0x41   : > { %2667 = sst [smem:[#allocation34_spill]] %s2708_s15  ;;  %p2309_p13 = por %p262_p8, %p69_p0 }
  0x42   : > { %2666 = sst [smem:[#allocation33_spill]] %s2665_s21  ;;  %p2313_p6 = por %p268_p10, %p75_p2 }
  0x43   : > { %s2668_s28 = scalar_select %p2309_p13, 1, 0 }
  0x44   : > { %s2670_s26 = scalar_select %p2313_p6, 1, 0 }
  0x45   : > { %2669 = sst [smem:[#allocation35_spill]] %s2668_s28  ;;  %s57_s7 = ssub.s32 %s2070_s18, %s2708_s15 }
  0x46   : > { %2671 = sst [smem:[#allocation36_spill]] %s2670_s26  ;;  %s364_s30 = sand.u32 1, %s2054_s14  }
  0x47   : > { %s59_s2 = sor.u32 %s58_s27, %s57_s7  ;;  %p88_p1 = scmp.eq.s32.totalorder %s57_s7, 0 }
  0x48   : > { %p60_p9 = scmp.eq.s32.totalorder %s59_s2, 0  ;;  %s2672_s23 = sadd.s32 1, %s2042_s11 }
  0x49   : > { %s2323_s4 = scalar_select %p88_p1, %s2042_s11, %s2672_s23  }
  0x4a   : > { %s2326_s5 = scalar_select %p60_p9, %s2054_s14, %s62_s25  }
  0x4b   : > { %s1461_s3 = sshll.u32 %s364_s30, 3  ;;  %s1462_s12 = sshll.u32 %s2070_s18, 1 }
  0x4c   : > { %s372_s28 = sadd.s32 %s2066_s17, %s1462_s12  ;;  %s368_s15 = scalar_lea.vmem [#allocation6], %s1461_s3 }
  0x4d   : > { %s1463_s26 = sshll.u32 %s372_s28, 3  ;;  %s378_s10 = sshll.u32 %s368_s15, 4  ;;  %s379_s10 = int_to_ptr.vmem [resolvable:$true] %s378_s10 }
  0x4e   : > { %s374_s27 = scalar_lea.hbm %s2604_s0, %s1463_s26  ;;  %p2673_p1 = scmp.lt.s32.totalorder %s2074_s19, 4 }
  0x4f   : > { %s376_s2 = sshll.u32 %s374_s27, 4  ;;  %s365_s7 = scalar_lea.sflag [#allocation7], %s364_s30  ;;  %s377_s2 = int_to_ptr.hbm [resolvable:$true] %s376_s2 }
  0x50   : > { %p1546_p0 = pnand %p2673_p1, %p2296_p4  ;;  %435 = sbr.rel (%p2206_p3) target bundleno = 1199 (0x4af), region = 52 }
  0x51   : > { %1554 = dma.hbm_to_vmem [thread:$0]  (!%p2245_p12), %s2261_s16, 256, %s424_s9, %s2252_s22, %s2660_s8, %s2660_s8, %s2659_s6  }
  0x52   : > { %1548 = dma.hbm_to_vmem [thread:$0]  (!%p1546_p0), %s377_s2, 128, %s379_s10, %s365_s7  }
  0x53   : > { %s2348_s20 = sand.u32 (!%p2206_p3), 1, %s2050_s13  }
  0x54   : > { %s1471_s3 = sshll.u32 (!%p2206_p3), %s2348_s20, 3  ;;  %s438_s15 = scalar_lea.sflag (!%p2206_p3), [#allocation7], %s2348_s20 }
  0x55   : > { %s441_s25 = scalar_lea.vmem [#allocation6], %s1471_s3 }
  0x56   : > { %2009 = dma.done.wait (%p2302_p7), %s438_s15, 128  }
  0x57   : > { %2011 = vsyncadd (%p2302_p7), %s438_s15, 4294967168  ;;  %s2675_s10 = sld [smem:[#allocation30_spill]] }
  0x58   : > { %s2676_s16 = sld [smem:[#allocation26_spill]] }
  0x5d   : > { %s447_s29 = sand.u32 1, %s2675_s10  }
  0x5e   : > { %s449_s22 = sand.u32 1, %s2676_s16   ;;  %s448_s8 = scalar_lea.sflag [#allocation10], %s447_s29 }
  0x5f   : > { %s2360_s6 = sshll.u32 %s449_s22, 4 }
  0x60   : > { %s451_s9 = scalar_lea.vmem [#allocation9], %s2360_s6 }
  0x61   : > { %2013 = dma.done.wait (%p2234_p11), %s448_s8, 512  }
  0x62   : > { %2015 = vsyncadd (%p2234_p11), %s448_s8, 4294966784  ;;  %s461_s1 = scalar_lea.vmem [#allocation11], %s2360_s6  ;;  %p2678_p3 = scmp.eq.s32.totalorder %s2675_s10, 0 }
  0x64   : > { %2017 = dma.done.wait (%p2678_p3), [#allocation13], 1024   ;;  %p2679_p9 = pmov %p2678_p3 }
  0x65   : > { %p2680_p12 = pmov %p2678_p3 }
  0x66   : > { %2019 = vsyncadd (%p2679_p9), [#allocation13], 4294966272 }
  0x67   : > { %2021 = dma.done.wait (%p2680_p12), [#allocation16], 512   ;;  %p2681_p2 = pmov %p2678_p3 }
  0x68   : > { %v537_v0 = vld [vmem:[#allocation12 + $0x18] sm:$0xff]  ;;  %v536_v2 = vld [vmem:[#allocation12 + $0x10] sm:$0xff]  ;;  %v535_v4 = vld [vmem:[#allocation12 + $0x8] sm:$0xff]  ;;  %vm538_vm0 = vcmask 261120   ;;  %s2081_s21 = smov 112   ;;  %vm645_vm1 = vcmask 64512  }
  0x69   : > { %2023 = vsyncadd (%p2681_p2), [#allocation16], 4294966784  ;;  %v578_v1 = vld [vmem:[#allocation14 + $0x18] sm:$0xff]  ;;  %554 = vmatpush.msra.mxu0 %v537_v0  ;;  %v577_v3 = vld [vmem:[#allocation14 + $0x10] sm:$0xff]  ;;  %s2082_s28 = smov 120   ;;  %s2083_s26 = smov 104  }
  0x6a   : > { %598 = vmatpush.msra.mxu1 %v578_v1  ;;  %v576_v5 = vld [vmem:[#allocation14 + $0x8] sm:$0xff]  ;;  %v534_v6 = vld [vmem:[#allocation12] sm:$0xff]  ;;  %v2376_v8 = vld [vmem:[%s441_s25] sm:$0xff]  ;;  %vm676_vm2 = vcmask 130048   ;;  %vm563_vm3 = vcmask 7168   ;;  %v2084_v32 = vmov -inf  }
  0x6b   : > { %555 = vmatpush.msra.mxu0 %v536_v2  ;;  %v575_v7 = vld [vmem:[#allocation14] sm:$0xff]  ;;  %v574_v10 = vld [vmem:[%s451_s9 + $0x8] sm:$0xff]  ;;  %v613_v16 = vld [vmem:[#allocation15 + $0x10] sm:$0xff]  ;;  %564 = vst.msk [vmem:[#allocation3] sm:$0xff] %vm563_vm3, %v2084_v32  ;;  %v2085_v33 = vmov 0   ;;  %v2086_v34 = vmov 0.0  }
  0x6c   : > { %599 = vmatpush.msra.mxu1 %v577_v3  ;;  %v573_v9 = vld [vmem:[%s451_s9] sm:$0xff]  ;;  %v614_v15 = vld [vmem:[#allocation15 + $0x18] sm:$0xff]  ;;  %v612_v17 = vld [vmem:[#allocation15 + $0x8] sm:$0xff]  ;;  %565 = vst.msk [vmem:[#allocation3 + $0x8] sm:$0xff] %vm563_vm3, %v2084_v32  ;;  %1674 = vset.pattern.permute.xlu0 %v2085_v33  ;;  %s2087_s30 = smov 16   ;;  %s2088_s23 = smov 8  }
  0x6d   : > { %556 = vmatpush.msra.mxu0 %v535_v4  ;;  %633 = vmatpush.msra.mxu2 %v614_v15  ;;  %v611_v18 = vld [vmem:[#allocation15] sm:$0xff]  ;;  %v610_v23 = vld [vmem:[%s461_s1 + $0x8] sm:$0xff]  ;;  %566 = vst.msk [vmem:[#allocation3 + $0x10] sm:$0xff] %vm563_vm3, %v2084_v32  ;;  %s2089_s27 = smov 24   ;;  %vm855_vm4 = vcmask 130112   ;;  %vm980_vm5 = vcmask 195712  }
  0x6e   : > { %600 = vmatpush.msra.mxu1 %v576_v5  ;;  %v609_v19 = vld [vmem:[%s461_s1] sm:$0xff]  ;;  %567 = vst.msk [vmem:[#allocation3 + $0x18] sm:$0xff] %vm563_vm3, %v2084_v32  ;;  %1675 = vset.pattern.permute.xlu2 %v2085_v33  ;;  %vm1105_vm6 = vcmask 261312   ;;  %s1478_s2 = sshll.u32 %s2348_s20, 5  ;;  %s2682_s12 = sld [smem:[#allocation29_spill]] }
  0x6f   : > { %557 = vmatpush.msra.mxu0 %v534_v6  ;;  %634 = vmatpush.msra.mxu2 %v613_v16  ;;  %572 = vst.msk [vmem:[#allocation5] sm:$0xff] %vm538_vm0, %v2086_v34  ;;  %s2503_s7 = scalar_lea.vmem [#allocation18], %s1478_s2  ;;  %s2683_s15 = sld [smem:[#allocation28_spill]] }
  0x70   : > { %601 = vmatpush.msra.mxu1 %v575_v7  ;;  %1479 = vmatmul.msk.f32.vlgmr.msra.gmra.mxu0 %vm538_vm0, %v2376_v8  ;;  %568 = vst.msk [vmem:[#allocation4] sm:$0xff] %vm563_vm3, %v2086_v34  ;;  %s2685_s6 = sld [smem:[#allocation45_spill]]  ;;  %s1247_s9 = sshll.u32 %s2503_s7, 4  ;;  %s1248_s9 = int_to_ptr.vmem [resolvable:$true] %s1247_s9 }
  0x71   : > { %1480 = vmatmul.msk.f32.vlgmr.msra.gmra.mxu1 %vm538_vm0, %v573_v9  ;;  %635 = vmatpush.msra.mxu2 %v612_v17  ;;  %569 = vst.msk [vmem:[#allocation4 + $0x8] sm:$0xff] %vm563_vm3, %v2086_v34 }
  0x72   : > { %1676 = vset.pattern.permute.xlu1 %v2085_v33  ;;  %570 = vst.msk [vmem:[#allocation4 + $0x10] sm:$0xff] %vm563_vm3, %v2086_v34  ;;  %v675_v36 = vld [vmem:[#allocation3] sm:$0xff] }
  0x73   : > { %636 = vmatpush.msra.mxu2 %v611_v18  ;;  %571 = vst.msk [vmem:[#allocation4 + $0x18] sm:$0xff] %vm563_vm3, %v2086_v34  ;;  %v789_v49 = vld [vmem:[#allocation3 + $0x8] sm:$0xff] }
  0x74   : > { %1482 = vmatmul.msk.f32.vlgmr.msra.gmra.mxu2 %vm538_vm0, %v609_v19  ;;  %v2430_v47 = vld [vmem:[#allocation3 + $0x10] sm:$0xff]  ;;  %s1507_s10 = sshll.u32 %s2682_s12, 3 }
  0x75   : > { %v2446_v61 = vld [vmem:[#allocation3 + $0x18] sm:$0xff]  ;;  %s1244_s16 = sadd.s32 %s2683_s15, %s1507_s10 }
  0x76   : > { %s1508_s24 = sshll.u32 %s1244_s16, 3  ;;  %s1928_s2 = scalar_lea.hbm %s2685_s6, 128 }
  0x77   : > { %s1246_s8 = scalar_lea.hbm %s2685_s6, %s1508_s24 }
  0x78   : > { %s1249_s1 = sshll.u32 %s1246_s8, 4  ;;  %s1250_s1 = int_to_ptr.hbm [resolvable:$true] %s1249_s1 }
  0x79   : > { %1481 = vmatmul.msk.f32.gmra.mxu1 %vm538_vm0, %v574_v10 }
  0x7c   : > { %1483 = vmatmul.msk.f32.gmra.mxu2 %vm538_vm0, %v610_v23 }
  0xed   : > { %v559_v11 = vpop.f32.mrf.mxu0 }
  0xee   : > { %v603_v12 = vpop.f32.mrf.mxu1  ;;  %562 = vst.msk [vmem:[#allocation2] sm:$0xff] %vm538_vm0, %v559_v11 }
  0xef   : > { %885 = vrot.lane.b32.xlu2 %v603_v12, %s2081_s21 }
  0xf5   : > { %v881_v14 = vld [vmem:[#allocation2] sm:$0xff] }
  0xf6   : > { %v606_v13 = vpop.f32.mrf.mxu1  ;;  %756 = vrot.lane.b32.xlu1 %v881_v14, %s2082_s28 }
  0xf7   : > { %760 = vrot.lane.b32.xlu0 %v606_v13, %s2082_s28  ;;  %1484 = vmatpush.xpose.msk.msra.mxu3 %vm645_vm1, %v606_v13  ;;  %v638_v35 = vpop.f32.mrf.mxu2 }
  0xf8   : > { %883 = vrot.lane.b32.xlu2 %v881_v14, %s2081_s21 }
  0xfb   : > { %1485 = vmatpush.xpose.msk.msra.mxu3 %vm645_vm1, %v603_v12 }
  0xfe   : > { %1486 = vmatmul.msk.f32.vlgmr.msra.gmra.mxu3 %vm645_vm1, %v881_v14  ;;  %887 = vrot.lane.b32.xlu1 %v606_v13, %s2081_s21 }
  0xff   : > { %758 = vrot.lane.b32.xlu0 %v603_v12, %s2082_s28  ;;  %v641_v38 = vpop.f32.mrf.mxu2 }
 0x100   : > { %1008 = vrot.lane.b32.xlu2 %v881_v14, %s2083_s26  ;;  %722 = vmatpush.msrb.mxu0 %v641_v38  ;;  %v1682_v59 = vpack.i.bf16 %v638_v35, %v641_v38 }
 0x102   : > { %723 = vmatpush.msrb.mxu0 %v638_v35 }
 0x106   : > { %1010 = vrot.lane.b32.xlu1 %v603_v12, %s2083_s26 }
 0x107   : > { %1012 = vrot.lane.b32.xlu0 %v606_v13, %s2083_s26 }
 0x149   : > { %v886_v22 = vpop.permute.xlu2 %885 }
 0x152   : > { %v884_v26 = vpop.permute.xlu2 %883 }
 0x15a   : > { %v1009_v29 = vpop.permute.xlu2 %1008 }
 0x168   : > { %v757_v21 = vpop.permute.xlu1 %756 }
 0x169   : > { %v761_v20 = vpop.permute.xlu0 %760 }
 0x16a   : > { %1488 = vmatpush.xpose.msk.msrb.mxu3 %vm645_vm1, %v761_v20 }
 0x170   : > { %v888_v25 = vpop.permute.xlu1 %887 }
 0x171   : > { %v759_v24 = vpop.permute.xlu0 %758  ;;  %1493 = vmatpush.xpose.msk.msrb.mxu1 %vm645_vm1, %v888_v25 }
 0x172   : > { %1489 = vmatpush.xpose.msk.msrb.mxu3 %vm645_vm1, %v759_v24 }
 0x175   : > { %1490 = vmatmul.msk.f32.vlgmr.msrb.gmra.mxu3 %vm645_vm1, %v757_v21  ;;  %1494 = vmatpush.xpose.msk.msrb.mxu1 %vm645_vm1, %v886_v22 }
 0x178   : > { %1495 = vmatmul.msk.f32.vlgmr.msrb.gmra.mxu1 %vm645_vm1, %v884_v26  ;;  %v1011_v28 = vpop.permute.xlu1 %1010 }
 0x179   : > { %v1013_v27 = vpop.permute.xlu0 %1012 }
 0x17a   : > { %1498 = vmatpush.xpose.msk.msra.mxu3 %vm645_vm1, %v1013_v27 }
 0x17e   : > { %1499 = vmatpush.xpose.msk.msra.mxu3 %vm645_vm1, %v1011_v28  ;;  %v698_v28 = vld [vmem:[#allocation5] sm:$0xff] }
 0x181   : > { %v672_v30 = vpop.f32.mrf.mxu3  ;;  %1500 = vmatmul.msk.f32.vlgmr.msra.gmra.mxu3 %vm645_vm1, %v1009_v29 }
 0x182   : > { %v677_v31 = vsel %vm676_vm2, %v672_v30, -inf }
 0x183   : > { %678 = vmax.xlane.f32.xlu0 %v677_v31 }
 0x1f5   : > { %v912_v39 = vpop.f32.mrf.mxu1 }
 0x1f6   : > { %v679_v37 = vpop.xlane.xlu0 %678  ;;  %v917_v41 = vsel %vm676_vm2, %v912_v39, -inf }
 0x1f7   : > { %v680_v40 = vmax.f32 %v675_v36, %v679_v37  ;;  %918 = vmax.xlane.f32.xlu2 %v917_v41  ;;  %v692_v37 = vld [vmem:[#allocation4] sm:$0xff] }
 0x1f8   : > { %v2421_v42 = vpop.f32.mrf.mxu3 }
 0x1f9   : > { %v681_v43 = vsub.f32 %v675_v36, %v680_v40  ;;  %731 = vst.msk [vmem:[#allocation3] sm:$0xff] %vm563_vm3, %v680_v40  ;;  %686 = vperm.xlu0 %1674, %v680_v40   ;;  %v790_v44 = vsel %vm676_vm2, %v2421_v42, -inf }
 0x1fa   : > { %791 = vmax.xlane.f32.xlu1 %v790_v44 }
 0x1fb   : > { %v682_v2 = vmul.f32 1.442695, %v681_v43 }
 0x204   : > { %v2426_v45 = vpop.f32.mrf.mxu3 }
 0x205   : > { %v1042_v46 = vsel %vm676_vm2, %v2426_v45, -inf }
 0x206   : > { %1043 = vmax.xlane.f32.xlu2 %v1042_v46 }
 0x26a   : > { %v919_v50 = vpop.xlane.xlu2 %918 }
 0x26b   : > { %v687_v48 = vpop.permute.xlu0 %686  ;;  %v2433_v52 = vmax.f32 %v2430_v47, %v919_v50  ;;  %v806_v50 = vld [vmem:[#allocation4 + $0x8] sm:$0xff] }
 0x26c   : > { %v689_v51 = vsub.f32 %v672_v30, %v687_v48 }
 0x26d   : > { %v792_v53 = vpop.xlane.xlu1 %791  ;;  %v921_v56 = vsub.f32 %v2430_v47, %v2433_v52  ;;  %982 = vst.msk [vmem:[#allocation3 + $0x10] sm:$0xff] %vm563_vm3, %v2433_v52  ;;  %926 = vperm.xlu2 %1675, %v2433_v52  }
 0x26e   : > { %v690_v54 = vmul.f32 1.442695, %v689_v51  ;;  %v793_v55 = vmax.f32 %v789_v49, %v792_v53 }
 0x26f   : > { %v922_v35 = vmul.f32 1.442695, %v921_v56 }
 0x270   : > { %1694 = vpow2.f32 %v690_v54  ;;  %v794_v57 = vsub.f32 %v789_v49, %v793_v55  ;;  %857 = vst.msk [vmem:[#allocation3 + $0x8] sm:$0xff] %vm563_vm3, %v793_v55  ;;  %799 = vperm.xlu1 %1676, %v793_v55  }
 0x272   : > { %v795_v58 = vmul.f32 1.442695, %v794_v57 }
 0x274   : > { %1696 = vpow2.f32 %v795_v58  ;;  %v1058_v58 = vld [vmem:[#allocation4 + $0x18] sm:$0xff] }
 0x275   : > { %1683 = vrot.lane.b32.xlu2 %v1682_v59, %s2081_s21  ;;  %1698 = vpow2.f32 %v682_v2  ;;  %s1218_s21 = scalar_lea.sflag [#allocation19], %s2348_s20 }
 0x276   : > { %v2441_v60 = vpop.eup %1694 }
 0x277   : > { %1487 = vmatmul.msk.f32.vlgmr.msrb.gmra.mxu0 %vm676_vm2, %v2441_v60  ;;  %v694_v4 = vsel %vm676_vm2, %v2441_v60, 0.0 }
 0x278   : > { %1678 = vrot.lane.b32.xlu1 %v1682_v59, %s2082_s28  ;;  %s1922_s28 = sshra.s32 %s1250_s1, 4  ;;  %s1923_s28 = int_to_ptr.hbm [resolvable:$true] %s1922_s28 }
 0x279   : > { %v1044_v62 = vpop.xlane.xlu2 %1043  ;;  %p1929_p7 = scmp.lt.s32.totalorder %s1923_s28, %s2685_s6 }
 0x27a   : > { %v2449_v63 = vpop.eup %1696  ;;  %v2452_v0 = vmax.f32 %v2446_v61, %v1044_v62 }
 0x27b   : > { %815 = vperm.xlu0 %1674, %v2449_v63   ;;  %v1699_v3 = vpop.eup %1698  ;;  %v807_v51 = vmul.f32 %v2449_v63, %v806_v50 }
 0x27c   : > { %v1046_v1 = vsub.f32 %v2446_v61, %v2452_v0  ;;  %1107 = vst.msk [vmem:[#allocation3 + $0x18] sm:$0xff] %vm563_vm3, %v2452_v0 }
 0x27d   : > { %1688 = vrot.lane.b32.xlu2 %v1682_v59, %s2083_s26  ;;  %s1924_s26 = scalar_lea.hbm %s1923_s28, 32 }
 0x27e   : > { %v1047_v47 = vmul.f32 1.442695, %v1046_v1  ;;  %p1925_p11 = scmp.ne.s32.totalorder %s1923_s28, %s1924_s26  ;;  %p1930_p8 = scmp.lt.s32.totalorder %s1928_s2, %s1924_s26 }
 0x280   : > { %1051 = vperm.xlu1 %1676, %v2452_v0   ;;  %p1926_p4 = pnand %p1925_p11, %p2309_p13  ;;  %p1931_p10 = por %p1930_p8, %p1929_p7 }
 0x282   : > { %p1927_p5 = pneg %p1926_p4 }
 0x284   : > { %p1932_p1 = pnand %p1931_p10, %p1927_p5 }
 0x288   : > { %701 = vperm.xlu1 %1676, %v1699_v3  }
 0x2a5   : > { %695 = vadd.xlane.f32.xlu0 %v694_v4 }
 0x2c7   : > { %v927_v5 = vpop.permute.xlu2 %926 }
 0x2c8   : > { %v929_v6 = vsub.f32 %v912_v39, %v927_v5  ;;  %v693_v39 = vmul.f32 %v1699_v3, %v692_v37 }
 0x2ca   : > { %v930_v7 = vmul.f32 1.442695, %v929_v6 }
 0x2cc   : > { %1700 = vpow2.f32 %v930_v7 }
 0x2cf   : > { %v1684_v9 = vpop.permute.xlu2 %1683 }
 0x2d0   : > { %v1685_v10 = vunpack.i.l.bf16 %v1684_v9  ;;  %v1686_v12 = vunpack.i.h.bf16 %v1684_v9 }
 0x2d2   : > { %v2463_v11 = vpop.eup %1700  ;;  %969 = vmatpush.msrb.mxu2 %v1685_v10 }
 0x2d3   : > { %v935_v13 = vsel %vm676_vm2, %v2463_v11, 0.0 }
 0x2d4   : > { %970 = vmatpush.msrb.mxu2 %v1686_v12  ;;  %936 = vadd.xlane.f32.xlu1 %v935_v13 }
 0x2d5   : > { %1496 = vmatmul.msk.f32.vlgmr.msrb.gmra.mxu2 %vm676_vm2, %v2463_v11 }
 0x2d7   : > { %v1689_v19 = vpop.permute.xlu2 %1688 }
 0x2d8   : > { %v1690_v23 = vunpack.i.l.bf16 %v1689_v19  ;;  %v1691_v24 = vunpack.i.h.bf16 %v1689_v19 }
 0x2e2   : > { %v800_v14 = vpop.permute.xlu1 %799 }
 0x2e3   : > { %v802_v15 = vsub.f32 %v2421_v42, %v800_v14  ;;  %v933_v42 = vld [vmem:[#allocation4 + $0x10] sm:$0xff] }
 0x2e5   : > { %v803_v16 = vmul.f32 1.442695, %v802_v15 }
 0x2e7   : > { %1702 = vpow2.f32 %v803_v16 }
 0x2ea   : > { %v1679_v17 = vpop.permute.xlu1 %1678 }
 0x2eb   : > { %v1680_v18 = vunpack.i.l.bf16 %v1679_v17  ;;  %v1681_v21 = vunpack.i.h.bf16 %v1679_v17 }
 0x2ed   : > { %v2470_v20 = vpop.eup %1702  ;;  %844 = vmatpush.msra.mxu0 %v1680_v18  ;;  %v816_v36 = vpop.permute.xlu0 %815 }
 0x2ee   : > { %v808_v22 = vsel %vm676_vm2, %v2470_v20, 0.0 }
 0x2ef   : > { %809 = vadd.xlane.f32.xlu2 %v808_v22  ;;  %845 = vmatpush.msra.mxu0 %v1681_v21 }
 0x2f0   : > { %1491 = vmatmul.msk.f32.vlgmr.msra.gmra.mxu0 %vm676_vm2, %v2470_v20 }
 0x2f1   : > { %1094 = vmatpush.msrb.mxu0 %v1690_v23 }
 0x2f2   : > { %v1052_v25 = vpop.permute.xlu1 %1051 }
 0x2f3   : > { %v1054_v26 = vsub.f32 %v2426_v45, %v1052_v25  ;;  %1095 = vmatpush.msrb.mxu0 %v1691_v24 }
 0x2f4   : > { %v725_v31 = vpop.f32.mrf.mxu0 }
 0x2f5   : > { %v1055_v27 = vmul.f32 1.442695, %v1054_v26 }
 0x2f7   : > { %1704 = vpow2.f32 %v1055_v27 }
 0x2f8   : > { %1706 = vpow2.f32 %v922_v35 }
 0x2fa   : > { %v702_v29 = vpop.permute.xlu1 %701 }
 0x2fb   : > { %v704_v30 = vmul.f32 %v702_v29, %v698_v28 }
 0x2fd   : > { %v2477_v32 = vpop.eup %1704  ;;  %v728_v33 = vadd.f32 %v725_v31, %v704_v30 }
 0x2fe   : > { %1501 = vmatmul.msk.f32.vlgmr.msrb.gmra.mxu0 %vm676_vm2, %v2477_v32  ;;  %v1060_v34 = vsel %vm676_vm2, %v2477_v32, 0.0  ;;  %v1707_v38 = vpop.eup %1706 }
 0x2ff   : > { %729 = vst.msk [vmem:[#allocation5] sm:$0xff] %vm645_vm1, %v728_v33  ;;  %1061 = vadd.xlane.f32.xlu1 %v1060_v34  ;;  %v934_v43 = vmul.f32 %v1707_v38, %v933_v42 }
 0x306   : > { %v812_v4 = vld [vmem:[#allocation5] sm:$0xff] }
 0x307   : > { %v818_v6 = vmul.f32 %v816_v36, %v812_v4 }
 0x318   : > { %v696_v40 = vpop.xlane.xlu0 %695  ;;  %942 = vperm.xlu1 %1676, %v1707_v38  }
 0x319   : > { %v697_v41 = vadd.f32 %v696_v40, %v693_v39 }
 0x31b   : > { %732 = vst.msk [vmem:[#allocation4] sm:$0xff] %vm563_vm3, %v697_v41 }
 0x322   : > { %v1135_v52 = vld [vmem:[#allocation4] sm:$0xff] }
 0x347   : > { %v937_v44 = vpop.xlane.xlu1 %936 }
 0x348   : > { %v938_v45 = vadd.f32 %v937_v44, %v934_v43 }
 0x34a   : > { %983 = vst.msk [vmem:[#allocation4 + $0x10] sm:$0xff] %vm563_vm3, %v938_v45 }
 0x351   : > { %v1155_v46 = vld [vmem:[#allocation4 + $0x10] sm:$0xff] }
 0x352   : > { %1708 = vrcp.f32 %v1155_v46 }
 0x353   : > { %1710 = vpow2.f32 %v1047_v47 }
 0x354   : > { %1712 = vrcp.f32 %v1135_v52 }
 0x358   : > { %v1709_v48 = vpop.eup %1708  ;;  %v972_v49 = vpop.f32.mrf.mxu2 }
 0x359   : > { %976 = vrot.lane.b32.xlu0 %v972_v49, %s2087_s30  ;;  %1159 = vperm.xlu1 %1676, %v1709_v48   ;;  %v1711_v53 = vpop.eup %1710 }
 0x35a   : > { %v1713_v56 = vpop.eup %1712  ;;  %v1059_v59 = vmul.f32 %v1711_v53, %v1058_v58 }
 0x361   : > { %1067 = vperm.xlu0 %1674, %v1711_v53  }
 0x362   : > { %v810_v54 = vpop.xlane.xlu2 %809 }
 0x363   : > { %v811_v55 = vadd.f32 %v810_v54, %v807_v51 }
 0x365   : > { %858 = vst.msk [vmem:[#allocation4 + $0x8] sm:$0xff] %vm563_vm3, %v811_v55  ;;  %861 = vperm.xlu1 %1676, %v811_v55  }
 0x369   : > { %1139 = vperm.xlu0 %1674, %v1713_v56  }
 0x36c   : > { %v1145_v63 = vld [vmem:[#allocation4 + $0x8] sm:$0xff] }
 0x36d   : > { %v847_v57 = vpop.f32.mrf.mxu0  ;;  %1714 = vrcp.f32 %v1145_v63 }
 0x36e   : > { %851 = vrot.lane.b32.xlu2 %v847_v57, %s2088_s23 }
 0x372   : > { %v1062_v61 = vpop.xlane.xlu1 %1061 }
 0x373   : > { %v1063_v62 = vadd.f32 %v1062_v61, %v1059_v59  ;;  %v1715_v2 = vpop.eup %1714 }
 0x375   : > { %1108 = vst.msk [vmem:[#allocation4 + $0x18] sm:$0xff] %vm563_vm3, %v1063_v62 }
 0x37b   : > { %v1097_v0 = vpop.f32.mrf.mxu0 }
 0x37c   : > { %1101 = vrot.lane.b32.xlu2 %v1097_v0, %s2089_s27  ;;  %v1165_v1 = vld [vmem:[#allocation4 + $0x18] sm:$0xff] }
 0x37d   : > { %1716 = vrcp.f32 %v1165_v1 }
 0x383   : > { %v1717_v3 = vpop.eup %1716 }
 0x384   : > { %1149 = vperm.xlu2 %1675, %v1715_v2   ;;  %1169 = vperm.xlu0 %1674, %v1717_v3  }
 0x38a   : > { %v943_v5 = vpop.permute.xlu1 %942 }
 0x38c   : > { %735 = vperm.xlu2 %1675, %v697_v41   ;;  %986 = vperm.xlu0 %1674, %v938_v45  }
 0x394   : > { %1111 = vperm.xlu2 %1675, %v1063_v62  }
 0x3c8   : > { %v852_v7 = vpop.permute.xlu2 %851 }
 0x3c9   : > { %v854_v9 = vadd.f32 %v852_v7, %v818_v6 }
 0x3cb   : > { %856 = vst.msk [vmem:[#allocation5] sm:$0xff] %vm855_vm4, %v854_v9  ;;  %v2497_v10 = vpop.permute.xlu1 %1159  ;;  %v977_v14 = vpop.permute.xlu0 %976 }
 0x3d2   : > { %v939_v12 = vld [vmem:[#allocation5] sm:$0xff] }
 0x3d3   : > { %v945_v13 = vmul.f32 %v943_v5, %v939_v12  ;;  %v1068_v19 = vpop.permute.xlu0 %1067 }
 0x3d5   : > { %v979_v15 = vadd.f32 %v977_v14, %v945_v13 }
 0x3d6   : > { %v1102_v16 = vpop.permute.xlu2 %1101 }
 0x3d7   : > { %981 = vst.msk [vmem:[#allocation5] sm:$0xff] %vm980_vm5, %v979_v15  ;;  %v862_v17 = vpop.permute.xlu1 %861 }
 0x3d8   : > { %1718 = vrcp.f32 %v862_v17  ;;  %v875_v27 = vand.u32 2147483648, %v862_v17  ;;  %v873_v29 = vand.u32 2147483647, %v862_v17  ;;  %vm869_vm8 = vweird.f32 %v862_v17 }
 0x3da   : > { %v876_v31 = vor.u32 1.1754944e-38, %v875_v27  ;;  %vm874_vm10 = vcmp.eq.f32.partialorder %v873_v29, 8.507059e+37 }
 0x3db   : > { %v1140_v38 = vpop.permute.xlu0 %1139 }
 0x3de   : > { %v1719_v18 = vpop.eup %1718  ;;  %v1064_v21 = vld [vmem:[#allocation5] sm:$0xff]  ;;  %v1150_v22 = vpop.permute.xlu2 %1149 }
 0x3df   : > { %v1070_v23 = vmul.f32 %v1068_v19, %v1064_v21  ;;  %v865_v24 = vmul.f32 %v1719_v18, %v862_v17  ;;  %vm870_vm7 = vweird.f32 %v1719_v18 }
 0x3e0   : > { %vm871_vm9 = vmor %vm869_vm8, %vm870_vm7 }
 0x3e1   : > { %v1104_v25 = vadd.f32 %v1102_v16, %v1070_v23  ;;  %v866_v26 = vsub.f32 1.0, %v865_v24 }
 0x3e3   : > { %1106 = vst.msk [vmem:[#allocation5] sm:$0xff] %vm1105_vm6, %v1104_v25  ;;  %v867_v28 = vmul.f32 %v1719_v18, %v866_v26 }
 0x3e5   : > { %v868_v30 = vadd.f32 %v1719_v18, %v867_v28 }
 0x3e6   : > { %v736_v33 = vpop.permute.xlu2 %735 }
 0x3e7   : > { %v872_v34 = vsel %vm871_vm9, %v1719_v18, %v868_v30  ;;  %1720 = vrcp.f32 %v736_v33  ;;  %v749_v44 = vand.u32 2147483648, %v736_v33  ;;  %v747_v46 = vand.u32 2147483647, %v736_v33 }
 0x3e8   : > { %v877_v35 = vsel %vm874_vm10, %v876_v31, %v872_v34  ;;  %vm743_vm12 = vweird.f32 %v736_v33 }
 0x3e9   : > { %v878_v36 = vmul.f32 %v2470_v20, %v877_v35  ;;  %v750_v50 = vor.u32 1.1754944e-38, %v749_v44  ;;  %vm748_vm14 = vcmp.eq.f32.partialorder %v747_v46, 8.507059e+37 }
 0x3ea   : > { %v1134_v37 = vld [vmem:[#allocation5] sm:$0xff] }
 0x3eb   : > { %1492 = vst.msk [vmem:[%s2503_s7 + $0x8] sm:$0xff] %vm676_vm2, %v878_v36  ;;  %v1142_v39 = vmul.f32 %v1140_v38, %v1134_v37 }
 0x3ed   : > { %v1721_v40 = vpop.eup %1720  ;;  %1143 = vst.msk [vmem:[#allocation5] sm:$0xff] %vm645_vm1, %v1142_v39 }
 0x3ee   : > { %v739_v41 = vmul.f32 %v1721_v40, %v736_v33  ;;  %v1112_v42 = vpop.permute.xlu2 %1111  ;;  %vm744_vm11 = vweird.f32 %v1721_v40 }
 0x3ef   : > { %1722 = vrcp.f32 %v1112_v42  ;;  %vm745_vm13 = vmor %vm743_vm12, %vm744_vm11  ;;  %v1125_v57 = vand.u32 2147483648, %v1112_v42  ;;  %v1123_v59 = vand.u32 2147483647, %v1112_v42  ;;  %vm1119_vm1 = vweird.f32 %v1112_v42 }
 0x3f0   : > { %v740_v43 = vsub.f32 1.0, %v739_v41 }
 0x3f1   : > { %v1126_v62 = vor.u32 1.1754944e-38, %v1125_v57  ;;  %vm1124_vm7 = vcmp.eq.f32.partialorder %v1123_v59, 8.507059e+37 }
 0x3f2   : > { %v741_v45 = vmul.f32 %v1721_v40, %v740_v43 }
 0x3f4   : > { %v1144_v20 = vld [vmem:[#allocation5] sm:$0xff]  ;;  %v742_v47 = vadd.f32 %v1721_v40, %v741_v45 }
 0x3f5   : > { %v1723_v48 = vpop.eup %1722  ;;  %v1152_v49 = vmul.f32 %v1150_v22, %v1144_v20 }
 0x3f6   : > { %v746_v51 = vsel %vm745_vm13, %v1721_v40, %v742_v47  ;;  %v1115_v52 = vmul.f32 %v1723_v48, %v1112_v42  ;;  %v1170_v53 = vpop.permute.xlu0 %1169  ;;  %vm1120_vm15 = vweird.f32 %v1723_v48 }
 0x3f7   : > { %1153 = vst.msk [vmem:[#allocation5] sm:$0xff] %vm855_vm4, %v1152_v49  ;;  %v751_v54 = vsel %vm748_vm14, %v750_v50, %v746_v51  ;;  %vm1121_vm3 = vmor %vm1119_vm1, %vm1120_vm15 }
 0x3f8   : > { %v752_v55 = vmul.f32 %v2441_v60, %v751_v54  ;;  %v1116_v56 = vsub.f32 1.0, %v1115_v52 }
 0x3fa   : > { %753 = vst.msk [vmem:[%s2503_s7] sm:$0xff] %vm676_vm2, %v752_v55  ;;  %v1117_v58 = vmul.f32 %v1723_v48, %v1116_v56 }
 0x3fc   : > { %v1118_v61 = vadd.f32 %v1723_v48, %v1117_v58 }
 0x3fe   : > { %v1122_v63 = vsel %vm1121_vm3, %v1723_v48, %v1118_v61  ;;  %v1154_v0 = vld [vmem:[#allocation5] sm:$0xff]  ;;  %v987_v1 = vpop.permute.xlu0 %986 }
 0x3ff   : > { %v1127_v2 = vsel %vm1124_vm7, %v1126_v62, %v1122_v63  ;;  %v1162_v3 = vmul.f32 %v2497_v10, %v1154_v0  ;;  %1724 = vrcp.f32 %v987_v1  ;;  %v1000_v12 = vand.u32 2147483648, %v987_v1 }
 0x400   : > { %v1128_v60 = vmul.f32 %v2477_v32, %v1127_v2  ;;  %v998_v14 = vand.u32 2147483647, %v987_v1  ;;  %vm994_vm8 = vweird.f32 %v987_v1 }
 0x401   : > { %1163 = vst.msk [vmem:[#allocation5] sm:$0xff] %vm980_vm5, %v1162_v3  ;;  %v1001_v32 = vor.u32 1.1754944e-38, %v1000_v12 }
 0x402   : > { %1502 = vst.msk [vmem:[%s2503_s7 + $0x18] sm:$0xff] %vm676_vm2, %v1128_v60  ;;  %vm999_vm5 = vcmp.eq.f32.partialorder %v998_v14, 8.507059e+37 }
 0x405   : > { %v1725_v4 = vpop.eup %1724 }
 0x406   : > { %v990_v5 = vmul.f32 %v1725_v4, %v987_v1  ;;  %vm995_vm4 = vweird.f32 %v1725_v4 }
 0x407   : > { %vm996_vm9 = vmor %vm994_vm8, %vm995_vm4 }
 0x408   : > { %v1164_v6 = vld [vmem:[#allocation5] sm:$0xff]  ;;  %v991_v7 = vsub.f32 1.0, %v990_v5 }
 0x409   : > { %v1172_v9 = vmul.f32 %v1170_v53, %v1164_v6 }
 0x40a   : > { %v992_v13 = vmul.f32 %v1725_v4, %v991_v7 }
 0x40b   : > { %1173 = vst.msk [vmem:[#allocation5] sm:$0xff] %vm1105_vm6, %v1172_v9 }
 0x40c   : > { %v993_v10 = vadd.f32 %v1725_v4, %v992_v13 }
 0x40e   : > { %v997_v15 = vsel %vm996_vm9, %v1725_v4, %v993_v10 }
 0x40f   : > { %v1002_v16 = vsel %vm999_vm5, %v1001_v32, %v997_v15 }
 0x410   : > { %v1003_v17 = vmul.f32 %v2463_v11, %v1002_v16 }
 0x412   : > { %1497 = vst.msk [vmem:[%s2503_s7 + $0x10] sm:$0xff] %vm676_vm2, %v1003_v17  ;;  %v1174_v18 = vld [vmem:[#allocation5] sm:$0xff] }
 0x413   : > { %v1175_v19 = vadd.f32 %v1174_v18, %v2376_v8 }
 0x415   : > { %v1176_v21 = vsel %vm538_vm0, %v1175_v19, 0.0  ;;  %v1180_v22 = vmul.f32 %v1175_v19, %v1175_v19 }
 0x416   : > { %1177 = vadd.xlane.f32.xlu1 %v1176_v21 }
 0x417   : > { %v1181_v23 = vsel %vm538_vm0, %v1180_v22, 0.0 }
 0x418   : > { %1182 = vadd.xlane.f32.xlu0 %v1181_v23 }
 0x419   : > { %1935 = shalt.err (!%p1932_p1)
}
 0x41a   : > { %s2090_s7 = smov 128   ;;  %s2091_s24 = smov 256  }
 0x41b   : > { %1532 = dma.vmem_to_hbm [thread:$0]  (%p2309_p13), %s1248_s9, 512, %s1250_s1, %s1218_s21, %s2090_s7, %s2091_s24, %s2088_s23  }
 0x41c   : > { %s1505_s29 = sshll.u32 %s2682_s12, 1  ;;  %s2686_s1 = sld [smem:[#allocation42_spill]] }
 0x41d   : > { %s1228_s22 = sadd.s32 %s2683_s15, %s1505_s29  ;;  %s2687_s26 = sld [smem:[#allocation44_spill]] }
 0x41e   : > { %s1506_s8 = sshll.u32 %s1228_s22, 3  ;;  %s2688_s27 = sld [smem:[#allocation43_spill]] }
 0x41f   : > { %s519_s2 = scalar_lea.vmem [#allocation17], %s1471_s3  ;;  %s1213_s7 = scalar_lea.sflag [#allocation8], %s2348_s20 }
 0x420   : > { %s1232_s10 = sshll.u32 %s519_s2, 4  ;;  %s1233_s10 = int_to_ptr.vmem [resolvable:$true] %s1232_s10 }
 0x422   : > { %v1692_v38 = vld [vmem:[%s2686_s1] ss:$0 sm:$0xff] }
 0x423   : > { %s1230_s12 = scalar_lea.hbm %s2687_s26, %s1506_s8  ;;  %s1956_s3 = scalar_lea.hbm %s2687_s26, 32 }
 0x424   : > { %v1693_v41 = vld [vmem:[%s2688_s27] ss:$0 sm:$0xff]  ;;  %s1234_s16 = sshll.u32 %s1230_s12, 4  ;;  %s1235_s16 = int_to_ptr.hbm [resolvable:$true] %s1234_s16 }
 0x425   : > { %s1950_s24 = sshra.s32 %s1235_s16, 4  ;;  %s1951_s24 = int_to_ptr.hbm [resolvable:$true] %s1950_s24 }
 0x426   : > { %s1952_s29 = scalar_lea.hbm %s1951_s24, 8  ;;  %p1957_p12 = scmp.lt.s32.totalorder %s1951_s24, %s2687_s26 }
 0x427   : > { %p1953_p0 = scmp.ne.s32.totalorder %s1951_s24, %s1952_s29  ;;  %p1958_p2 = scmp.lt.s32.totalorder %s1956_s3, %s1952_s29 }
 0x429   : > { %p1954_p3 = pnand %p1953_p0, %p2309_p13  ;;  %p1959_p11 = por %p1958_p2, %p1957_p12 }
 0x42b   : > { %p1955_p9 = pneg %p1954_p3 }
 0x42d   : > { %p1960_p4 = pnand %p1959_p11, %p1955_p9 }
 0x489   : > { %v1178_v8 = vpop.xlane.xlu1 %1177 }
 0x48a   : > { %v1179_v11 = vmul.f32 0.03125, %v1178_v8 }
 0x48b   : > { %v1183_v24 = vpop.xlane.xlu0 %1182 }
 0x48c   : > { %v1185_v25 = vmul.f32 %v1179_v11, %v1179_v11  ;;  %v1184_v26 = vmul.f32 0.03125, %v1183_v24  ;;  %v1188_v37 = vsub.f32 %v1175_v19, %v1179_v11 }
 0x48e   : > { %v1186_v27 = vsub.f32 %v1184_v26, %v1185_v25 }
 0x490   : > { %v1187_v28 = vmax.f32 %v1186_v27, 0.0 }
 0x492   : > { %v1189_v29 = vadd.f32 1e-05, %v1187_v28 }
 0x494   : > { %1726 = vrsqrt.f32 %v1189_v29  ;;  %vm1196_vm6 = vweird.f32 %v1189_v29 }
 0x49a   : > { %v1727_v30 = vpop.eup %1726 }
 0x49b   : > { %v1191_v31 = vmul.f32 %v1727_v30, %v1189_v29  ;;  %vm1197_vm2 = vweird.f32 %v1727_v30 }
 0x49c   : > { %vm1198_vm10 = vmor %vm1196_vm6, %vm1197_vm2 }
 0x49d   : > { %v1192_v33 = vmul.f32 %v1727_v30, %v1191_v31 }
 0x49f   : > { %v1193_v34 = vmul.f32 0.5, %v1192_v33 }
 0x4a1   : > { %v1194_v35 = vsub.f32 1.5, %v1193_v34 }
 0x4a3   : > { %v1195_v36 = vmul.f32 %v1727_v30, %v1194_v35 }
 0x4a5   : > { %v1199_v39 = vsel %vm1198_vm10, %v1727_v30, %v1195_v36 }
 0x4a6   : > { %v1200_v40 = vmul.f32 %v1199_v39, %v1188_v37 }
 0x4a8   : > { %v1205_v42 = vmul.f32 %v1692_v38, %v1200_v40 }
 0x4aa   : > { %v1210_v43 = vadd.f32 %v1693_v41, %v1205_v42 }
 0x4ac   : > { %1211 = vst.msk [vmem:[%s519_s2] sm:$0xff] %vm538_vm0, %v1210_v43 }
 0x4ad   : > { %1963 = shalt.err (!%p1960_p4)
}
 0x4ae   : > { %1531 = dma.vmem_to_hbm [thread:$0]  (%p2309_p13), %s1233_s10, 128, %s1235_s16, %s1213_s7  }
 0x4af PF: > { %s2689_s20 = sld [smem:[#allocation27_spill]]  ;;  %p1569_p5 = scmp.ge.s32.totalorder %s2074_s19, 2 }
 0x4b1   : > { %p1556_p7 = pnand %p1569_p5, %p2313_p6 }
 0x4b3   : > { %p1557_p8 = pneg %p1556_p7 }
 0x4b5   : > { %s1264_s21 = sand.u32 1, %s2689_s20  }
 0x4b6   : > { %s1265_s28 = scalar_lea.sflag [#allocation8], %s1264_s21 }
 0x4b7   : > { %2025 = dma.done.wait (%p1557_p8), %s1265_s28, 128  }
 0x4b8   : > { %2027 = vsyncadd (%p1557_p8), %s1265_s28, 4294967168  ;;  %s1275_s12 = scalar_lea.sflag [#allocation19], %s1264_s21 }
 0x4b9   : > { %2029 = dma.done.wait (%p1557_p8), %s1275_s12, 512  }
 0x4ba   : > { %2031 = vsyncadd (%p1557_p8), %s1275_s12, 4294966784  ;;  %s34_s19 = sadd.s32 1, %s2074_s19   ;;  %s2691_s30 = sld [smem:[#allocation26_spill]] }
 0x4bb   : > { %p31_p10 = scmp.ge.s32.totalorder %s34_s19, 6   ;;  %s2692_s25 = sld [smem:[#allocation32_spill]] }
 0x4bc   : > { %s2693_s27 = sld [smem:[#allocation34_spill]]  ;;  %s2694_s10 = smov %s2042_s11 }
 0x4bd   : > { %s2695_s11 = smov %s2323_s4  ;;  %s2696_s12 = smov %s2050_s13 }
 0x4be   : > { %s2697_s13 = smov %s2054_s14  ;;  %s2698_s14 = smov %s2326_s5 }
 0x4bf   : > { %s2699_s15 = smov %s2066_s17  ;;  %s2700_s16 = smov %s2070_s18 }
 0x4c0   :  { %33 = sbr.rel (!%p31_p10) target bundleno = 25 (0x19), region = 167 }
 0x4c1   : > { %s2701_s17 = smov %s2692_s25 }
 0x4c2   : > { %s2702_s18 = smov %s2693_s27 }
 0x4c5   :  { %1281 = vsyncpa [#allocation7], 1 }
 0x4c6   :  { %1283 = vsyncpa [#allocation7 + $0x1], 1 }
 0x4c7   :  { %1284 = vsyncpa [#allocation10], 1 }
 0x4c8   :  { %1286 = vsyncpa [#allocation10 + $0x1], 1 }
 0x4c9   :  { %1287 = vsyncpa [#allocation13], 1 }
 0x4ca   :  { %1288 = vsyncpa [#allocation16], 1 }
 0x4cb   :  { %1289 = vsyncpa [#allocation8], 1 }
 0x4cc   :  { %1291 = vsyncpa [#allocation8 + $0x1], 1 }
 0x4cd   :  { %1292 = vsyncpa [#allocation19], 1 }
 0x4ce   :  { %1294 = vsyncpa [#allocation19 + $0x1], 1 }

</bundles_post_ra>
